<compile_context>
chip_gen: v7x
topology: tpu7x:2x2x1
jax: 0.10.0
libtpu: 0.0.40
codegen_flags: <defaults>
</compile_context>

<pallas_src>
import jax
import jax.numpy as jnp
from jax.experimental import pallas as pl
from jax.experimental.pallas import tpu as pltpu

KSIZE = 7
PAD = 3


def spatial_attention_kernel(params_ref, x_ref, o_ref, pad_ref):
    # params_ref : SMEM (2*49 + 1,) f32  -- conv weights [cin][kh][kw], then bias
    # x_ref      : VMEM (1, C, H, W)     -- one batch element
    # o_ref      : VMEM (1, C, H, W)
    # pad_ref    : VMEM (2, H+6, W+6) f32 scratch (zero-padded pooled maps)
    _, C, H, W = x_ref.shape
    x = x_ref[0].astype(jnp.float32)                       # [C, H, W]

    # Channel mean / max as a short unrolled add/max chain (C is small & static).
    s = x[0]
    m = x[0]
    for c in range(1, C):
        s = s + x[c]
        m = jnp.maximum(m, x[c])
    avg = s * jnp.float32(1.0 / C)

    # Zero-padded pooled maps for the 7x7 'same' convolution.
    pad_ref[...] = jnp.zeros_like(pad_ref)
    pad_ref[0, pl.ds(PAD, H), pl.ds(PAD, W)] = avg
    pad_ref[1, pl.ds(PAD, H), pl.ds(PAD, W)] = m

    # conv(2 -> 1, 7x7, padding=3) + bias, fully unrolled: 98 scalar MACs (VPU).
    acc = jnp.full((H, W), params_ref[2 * KSIZE * KSIZE], jnp.float32)
    for c in range(2):
        for kh in range(KSIZE):
            for kw in range(KSIZE):
                w = params_ref[c * KSIZE * KSIZE + kh * KSIZE + kw]
                acc = acc + w * pad_ref[c, pl.ds(kh, H), pl.ds(kw, W)]

    att = 1.0 / (1.0 + jnp.exp(-acc))                      # sigmoid
    o_ref[0] = (x * att[None, :, :]).astype(o_ref.dtype)


def spatial_attention(x, weight, bias):
    """Pallas forward of SpatialAttention.

    x: [B, C, H, W]; weight: [1, 2, 7, 7]; bias: [1]. Returns [B, C, H, W].
    """
    B, C, H, W = x.shape
    params = jnp.concatenate(
        [weight.reshape(-1), bias.reshape(-1)]).astype(jnp.float32)   # (99,)

    return pl.pallas_call(
        spatial_attention_kernel,
        out_shape=jax.ShapeDtypeStruct((B, C, H, W), x.dtype),
        grid_spec=pltpu.PrefetchScalarGridSpec(
            num_scalar_prefetch=0,
            grid=(B,),
            in_specs=[
                pl.BlockSpec(memory_space=pltpu.MemorySpace.SMEM),    # params
                pl.BlockSpec((1, C, H, W), lambda b: (b, 0, 0, 0)),   # x tile
            ],
            out_specs=pl.BlockSpec((1, C, H, W), lambda b: (b, 0, 0, 0)),
            scratch_shapes=[
                pltpu.VMEM((2, H + 2 * PAD, W + 2 * PAD), jnp.float32)],
        ),
        compiler_params=pltpu.CompilerParams(
            dimension_semantics=("parallel",)),
    )(params, x)


# ---------------- pure-JAX reference (for correctness check) ----------------
def spatial_attention_reference(x, weight, bias):
    avg = jnp.mean(x, axis=1, keepdims=True)
    mx = jnp.max(x, axis=1, keepdims=True)
    concat = jnp.concatenate([avg, mx], axis=1)            # [B, 2, H, W]
    conv = jax.lax.conv_general_dilated(
        concat, weight, window_strides=(1, 1),
        padding=((PAD, PAD), (PAD, PAD)),
        dimension_numbers=('NCHW', 'OIHW', 'NCHW'),
        precision=jax.lax.Precision.HIGHEST)
    att = jax.nn.sigmoid(conv + bias.reshape(1, -1, 1, 1))
    return x * att


if __name__ == "__main__":
    B, C, H, W = 2, 4, 16, 16
    key = jax.random.PRNGKey(0)
    kx, kw, kb = jax.random.split(key, 3)

    x = jax.random.normal(kx, (B, C, H, W), jnp.float32)
    weight = jax.random.normal(kw, (1, 2, KSIZE, KSIZE), jnp.float32) * 0.1
    bias = jax.random.normal(kb, (1,), jnp.float32) * 0.1

    out = jax.block_until_ready(spatial_attention(x, weight, bias))
    ref = jax.block_until_ready(spatial_attention_reference(x, weight, bias))

    assert out.shape == x.shape, (out.shape, x.shape)
    max_err = float(jnp.max(jnp.abs(out - ref)))
    assert jnp.allclose(out, ref, rtol=1e-4, atol=1e-4), max_err
    print("KERNEL_OK")
</pallas_src>

<mosaic_0001>
module attributes {stable_mosaic.version = 11 : i64} {
  func.func @spatial_attention_kernel(%arg0: i32, %arg1: memref<99xf32, #tpu.memory_space<smem>>, %arg2: memref<1x4x16x16xf32, #tpu.memory_space<vmem>>, %arg3: memref<1x4x16x16xf32, #tpu.memory_space<vmem>>, %arg4: memref<2x22x22xf32, #tpu.memory_space<vmem>>) attributes {dimension_semantics = [#tpu.dimension_semantics<parallel>], iteration_bounds = array<i64: 2>, scalar_prefetch = 0 : i64, scratch_operands = 1 : i64, tpu.core_type = #tpu.core_type<tc>, window_params = [{transform_indices = @transform_0, window_bounds = array<i64: 99>}, {transform_indices = @transform_1, window_bounds = array<i64: 1, 4, 16, 16>}, {transform_indices = @transform_2, window_bounds = array<i64: 1, 4, 16, 16>}]} {
    %c0 = arith.constant 0 : index
    %c0_0 = arith.constant 0 : index
    %c0_1 = arith.constant 0 : index
    %c0_2 = arith.constant 0 : index
    %0 = vector.load %arg2[%c0, %c0_0, %c0_1, %c0_2] : memref<1x4x16x16xf32, #tpu.memory_space<vmem>>, vector<1x4x16x16xf32>
    %1 = vector.shape_cast %0 : vector<1x4x16x16xf32> to vector<4x16x16xf32>
    %2 = vector.extract_strided_slice %1 {offsets = [0, 0, 0], sizes = [1, 16, 16], strides = [1, 1, 1]} : vector<4x16x16xf32> to vector<1x16x16xf32>
    %3 = vector.shape_cast %2 : vector<1x16x16xf32> to vector<16x16xf32>
    %4 = vector.extract_strided_slice %1 {offsets = [0, 0, 0], sizes = [1, 16, 16], strides = [1, 1, 1]} : vector<4x16x16xf32> to vector<1x16x16xf32>
    %5 = vector.shape_cast %4 : vector<1x16x16xf32> to vector<16x16xf32>
    %6 = vector.extract_strided_slice %1 {offsets = [1, 0, 0], sizes = [1, 16, 16], strides = [1, 1, 1]} : vector<4x16x16xf32> to vector<1x16x16xf32>
    %7 = vector.shape_cast %6 : vector<1x16x16xf32> to vector<16x16xf32>
    %8 = arith.addf %3, %7 : vector<16x16xf32>
    %9 = vector.extract_strided_slice %1 {offsets = [1, 0, 0], sizes = [1, 16, 16], strides = [1, 1, 1]} : vector<4x16x16xf32> to vector<1x16x16xf32>
    %10 = vector.shape_cast %9 : vector<1x16x16xf32> to vector<16x16xf32>
    %11 = arith.maximumf %5, %10 : vector<16x16xf32>
    %12 = vector.extract_strided_slice %1 {offsets = [2, 0, 0], sizes = [1, 16, 16], strides = [1, 1, 1]} : vector<4x16x16xf32> to vector<1x16x16xf32>
    %13 = vector.shape_cast %12 : vector<1x16x16xf32> to vector<16x16xf32>
    %14 = arith.addf %8, %13 : vector<16x16xf32>
    %15 = vector.extract_strided_slice %1 {offsets = [2, 0, 0], sizes = [1, 16, 16], strides = [1, 1, 1]} : vector<4x16x16xf32> to vector<1x16x16xf32>
    %16 = vector.shape_cast %15 : vector<1x16x16xf32> to vector<16x16xf32>
    %17 = arith.maximumf %11, %16 : vector<16x16xf32>
    %18 = vector.extract_strided_slice %1 {offsets = [3, 0, 0], sizes = [1, 16, 16], strides = [1, 1, 1]} : vector<4x16x16xf32> to vector<1x16x16xf32>
    %19 = vector.shape_cast %18 : vector<1x16x16xf32> to vector<16x16xf32>
    %20 = arith.addf %14, %19 : vector<16x16xf32>
    %21 = vector.extract_strided_slice %1 {offsets = [3, 0, 0], sizes = [1, 16, 16], strides = [1, 1, 1]} : vector<4x16x16xf32> to vector<1x16x16xf32>
    %22 = vector.shape_cast %21 : vector<1x16x16xf32> to vector<16x16xf32>
    %23 = arith.maximumf %17, %22 : vector<16x16xf32>
    %cst = arith.constant 2.500000e-01 : f32
    %24 = vector.broadcast %cst : f32 to vector<16x16xf32>
    %25 = arith.mulf %20, %24 : vector<16x16xf32>
    %cst_3 = arith.constant 0.000000e+00 : f32
    %26 = vector.broadcast %cst_3 : f32 to vector<2x22x22xf32>
    %c0_4 = arith.constant 0 : index
    %c0_5 = arith.constant 0 : index
    %c0_6 = arith.constant 0 : index
    %27 = vector.load %arg4[%c0_4, %c0_5, %c0_6] : memref<2x22x22xf32, #tpu.memory_space<vmem>>, vector<2x22x22xf32>
    tpu.vector_store %arg4[%c0_4, %c0_5, %c0_6], %26 {strides = array<i32>} : memref<2x22x22xf32, #tpu.memory_space<vmem>>, vector<2x22x22xf32>,
    %c0_7 = arith.constant 0 : index
    %c3 = arith.constant 3 : index
    %c3_8 = arith.constant 3 : index
    %28 = vector.load %arg4[%c0_7, %c3, %c3_8] : memref<2x22x22xf32, #tpu.memory_space<vmem>>, vector<1x16x16xf32>
    %29 = vector.shape_cast %28 : vector<1x16x16xf32> to vector<16x16xf32>
    %30 = vector.shape_cast %25 : vector<16x16xf32> to vector<1x16x16xf32>
    tpu.vector_store %arg4[%c0_7, %c3, %c3_8], %30 {strides = array<i32>} : memref<2x22x22xf32, #tpu.memory_space<vmem>>, vector<1x16x16xf32>,
    %c1 = arith.constant 1 : index
    %c3_9 = arith.constant 3 : index
    %c3_10 = arith.constant 3 : index
    %31 = vector.load %arg4[%c1, %c3_9, %c3_10] : memref<2x22x22xf32, #tpu.memory_space<vmem>>, vector<1x16x16xf32>
    %32 = vector.shape_cast %31 : vector<1x16x16xf32> to vector<16x16xf32>
    %33 = vector.shape_cast %23 : vector<16x16xf32> to vector<1x16x16xf32>
    tpu.vector_store %arg4[%c1, %c3_9, %c3_10], %33 {strides = array<i32>} : memref<2x22x22xf32, #tpu.memory_space<vmem>>, vector<1x16x16xf32>,
    %c98 = arith.constant 98 : index
    %34 = memref.load %arg1[%c98] : memref<99xf32, #tpu.memory_space<smem>>
    %35 = vector.broadcast %34 : f32 to vector<16x16xf32>
    %c0_11 = arith.constant 0 : index
    %36 = memref.load %arg1[%c0_11] : memref<99xf32, #tpu.memory_space<smem>>
    %c0_12 = arith.constant 0 : index
    %c0_13 = arith.constant 0 : index
    %c0_14 = arith.constant 0 : index
    %37 = vector.load %arg4[%c0_12, %c0_13, %c0_14] : memref<2x22x22xf32, #tpu.memory_space<vmem>>, vector<1x16x16xf32>
    %38 = vector.shape_cast %37 : vector<1x16x16xf32> to vector<16x16xf32>
    %39 = vector.broadcast %36 : f32 to vector<16x16xf32>
    %40 = arith.mulf %39, %38 : vector<16x16xf32>
    %41 = arith.addf %35, %40 : vector<16x16xf32>
    %c1_15 = arith.constant 1 : index
    %42 = memref.load %arg1[%c1_15] : memref<99xf32, #tpu.memory_space<smem>>
    %c0_16 = arith.constant 0 : index
    %c0_17 = arith.constant 0 : index
    %c1_18 = arith.constant 1 : index
    %43 = vector.load %arg4[%c0_16, %c0_17, %c1_18] : memref<2x22x22xf32, #tpu.memory_space<vmem>>, vector<1x16x16xf32>
    %44 = vector.shape_cast %43 : vector<1x16x16xf32> to vector<16x16xf32>
    %45 = vector.broadcast %42 : f32 to vector<16x16xf32>
    %46 = arith.mulf %45, %44 : vector<16x16xf32>
    %47 = arith.addf %41, %46 : vector<16x16xf32>
    %c2 = arith.constant 2 : index
    %48 = memref.load %arg1[%c2] : memref<99xf32, #tpu.memory_space<smem>>
    %c0_19 = arith.constant 0 : index
    %c0_20 = arith.constant 0 : index
    %c2_21 = arith.constant 2 : index
    %49 = vector.load %arg4[%c0_19, %c0_20, %c2_21] : memref<2x22x22xf32, #tpu.memory_space<vmem>>, vector<1x16x16xf32>
    %50 = vector.shape_cast %49 : vector<1x16x16xf32> to vector<16x16xf32>
    %51 = vector.broadcast %48 : f32 to vector<16x16xf32>
    %52 = arith.mulf %51, %50 : vector<16x16xf32>
    %53 = arith.addf %47, %52 : vector<16x16xf32>
    %c3_22 = arith.constant 3 : index
    %54 = memref.load %arg1[%c3_22] : memref<99xf32, #tpu.memory_space<smem>>
    %c0_23 = arith.constant 0 : index
    %c0_24 = arith.constant 0 : index
    %c3_25 = arith.constant 3 : index
    %55 = vector.load %arg4[%c0_23, %c0_24, %c3_25] : memref<2x22x22xf32, #tpu.memory_space<vmem>>, vector<1x16x16xf32>
    %56 = vector.shape_cast %55 : vector<1x16x16xf32> to vector<16x16xf32>
    %57 = vector.broadcast %54 : f32 to vector<16x16xf32>
    %58 = arith.mulf %57, %56 : vector<16x16xf32>
    %59 = arith.addf %53, %58 : vector<16x16xf32>
    %c4 = arith.constant 4 : index
    %60 = memref.load %arg1[%c4] : memref<99xf32, #tpu.memory_space<smem>>
    %c0_26 = arith.constant 0 : index
    %c0_27 = arith.constant 0 : index
    %c4_28 = arith.constant 4 : index
    %61 = vector.load %arg4[%c0_26, %c0_27, %c4_28] : memref<2x22x22xf32, #tpu.memory_space<vmem>>, vector<1x16x16xf32>
    %62 = vector.shape_cast %61 : vector<1x16x16xf32> to vector<16x16xf32>
    %63 = vector.broadcast %60 : f32 to vector<16x16xf32>
    %64 = arith.mulf %63, %62 : vector<16x16xf32>
    %65 = arith.addf %59, %64 : vector<16x16xf32>
    %c5 = arith.constant 5 : index
    %66 = memref.load %arg1[%c5] : memref<99xf32, #tpu.memory_space<smem>>
    %c0_29 = arith.constant 0 : index
    %c0_30 = arith.constant 0 : index
    %c5_31 = arith.constant 5 : index
    %67 = vector.load %arg4[%c0_29, %c0_30, %c5_31] : memref<2x22x22xf32, #tpu.memory_space<vmem>>, vector<1x16x16xf32>
    %68 = vector.shape_cast %67 : vector<1x16x16xf32> to vector<16x16xf32>
    %69 = vector.broadcast %66 : f32 to vector<16x16xf32>
    %70 = arith.mulf %69, %68 : vector<16x16xf32>
    %71 = arith.addf %65, %70 : vector<16x16xf32>
    %c6 = arith.constant 6 : index
    %72 = memref.load %arg1[%c6] : memref<99xf32, #tpu.memory_space<smem>>
    %c0_32 = arith.constant 0 : index
    %c0_33 = arith.constant 0 : index
    %c6_34 = arith.constant 6 : index
    %73 = vector.load %arg4[%c0_32, %c0_33, %c6_34] : memref<2x22x22xf32, #tpu.memory_space<vmem>>, vector<1x16x16xf32>
    %74 = vector.shape_cast %73 : vector<1x16x16xf32> to vector<16x16xf32>
    %75 = vector.broadcast %72 : f32 to vector<16x16xf32>
    %76 = arith.mulf %75, %74 : vector<16x16xf32>
    %77 = arith.addf %71, %76 : vector<16x16xf32>
    %c7 = arith.constant 7 : index
    %78 = memref.load %arg1[%c7] : memref<99xf32, #tpu.memory_space<smem>>
    %c0_35 = arith.constant 0 : index
    %c1_36 = arith.constant 1 : index
    %c0_37 = arith.constant 0 : index
    %79 = vector.load %arg4[%c0_35, %c1_36, %c0_37] : memref<2x22x22xf32, #tpu.memory_space<vmem>>, vector<1x16x16xf32>
    %80 = vector.shape_cast %79 : vector<1x16x16xf32> to vector<16x16xf32>
    %81 = vector.broadcast %78 : f32 to vector<16x16xf32>
    %82 = arith.mulf %81, %80 : vector<16x16xf32>
    %83 = arith.addf %77, %82 : vector<16x16xf32>
    %c8 = arith.constant 8 : index
    %84 = memref.load %arg1[%c8] : memref<99xf32, #tpu.memory_space<smem>>
    %c0_38 = arith.constant 0 : index
    %c1_39 = arith.constant 1 : index
    %c1_40 = arith.constant 1 : index
    %85 = vector.load %arg4[%c0_38, %c1_39, %c1_40] : memref<2x22x22xf32, #tpu.memory_space<vmem>>, vector<1x16x16xf32>
    %86 = vector.shape_cast %85 : vector<1x16x16xf32> to vector<16x16xf32>
    %87 = vector.broadcast %84 : f32 to vector<16x16xf32>
    %88 = arith.mulf %87, %86 : vector<16x16xf32>
    %89 = arith.addf %83, %88 : vector<16x16xf32>
    %c9 = arith.constant 9 : index
    %90 = memref.load %arg1[%c9] : memref<99xf32, #tpu.memory_space<smem>>
    %c0_41 = arith.constant 0 : index
    %c1_42 = arith.constant 1 : index
    %c2_43 = arith.constant 2 : index
    %91 = vector.load %arg4[%c0_41, %c1_42, %c2_43] : memref<2x22x22xf32, #tpu.memory_space<vmem>>, vector<1x16x16xf32>
    %92 = vector.shape_cast %91 : vector<1x16x16xf32> to vector<16x16xf32>
    %93 = vector.broadcast %90 : f32 to vector<16x16xf32>
    %94 = arith.mulf %93, %92 : vector<16x16xf32>
    %95 = arith.addf %89, %94 : vector<16x16xf32>
    %c10 = arith.constant 10 : index
    %96 = memref.load %arg1[%c10] : memref<99xf32, #tpu.memory_space<smem>>
    %c0_44 = arith.constant 0 : index
    %c1_45 = arith.constant 1 : index
    %c3_46 = arith.constant 3 : index
    %97 = vector.load %arg4[%c0_44, %c1_45, %c3_46] : memref<2x22x22xf32, #tpu.memory_space<vmem>>, vector<1x16x16xf32>
    %98 = vector.shape_cast %97 : vector<1x16x16xf32> to vector<16x16xf32>
    %99 = vector.broadcast %96 : f32 to vector<16x16xf32>
    %100 = arith.mulf %99, %98 : vector<16x16xf32>
    %101 = arith.addf %95, %100 : vector<16x16xf32>
    %c11 = arith.constant 11 : index
    %102 = memref.load %arg1[%c11] : memref<99xf32, #tpu.memory_space<smem>>
    %c0_47 = arith.constant 0 : index
    %c1_48 = arith.constant 1 : index
    %c4_49 = arith.constant 4 : index
    %103 = vector.load %arg4[%c0_47, %c1_48, %c4_49] : memref<2x22x22xf32, #tpu.memory_space<vmem>>, vector<1x16x16xf32>
    %104 = vector.shape_cast %103 : vector<1x16x16xf32> to vector<16x16xf32>
    %105 = vector.broadcast %102 : f32 to vector<16x16xf32>
    %106 = arith.mulf %105, %104 : vector<16x16xf32>
    %107 = arith.addf %101, %106 : vector<16x16xf32>
    %c12 = arith.constant 12 : index
    %108 = memref.load %arg1[%c12] : memref<99xf32, #tpu.memory_space<smem>>
    %c0_50 = arith.constant 0 : index
    %c1_51 = arith.constant 1 : index
    %c5_52 = arith.constant 5 : index
    %109 = vector.load %arg4[%c0_50, %c1_51, %c5_52] : memref<2x22x22xf32, #tpu.memory_space<vmem>>, vector<1x16x16xf32>
    %110 = vector.shape_cast %109 : vector<1x16x16xf32> to vector<16x16xf32>
    %111 = vector.broadcast %108 : f32 to vector<16x16xf32>
    %112 = arith.mulf %111, %110 : vector<16x16xf32>
    %113 = arith.addf %107, %112 : vector<16x16xf32>
    %c13 = arith.constant 13 : index
    %114 = memref.load %arg1[%c13] : memref<99xf32, #tpu.memory_space<smem>>
    %c0_53 = arith.constant 0 : index
    %c1_54 = arith.constant 1 : index
    %c6_55 = arith.constant 6 : index
    %115 = vector.load %arg4[%c0_53, %c1_54, %c6_55] : memref<2x22x22xf32, #tpu.memory_space<vmem>>, vector<1x16x16xf32>
    %116 = vector.shape_cast %115 : vector<1x16x16xf32> to vector<16x16xf32>
    %117 = vector.broadcast %114 : f32 to vector<16x16xf32>
    %118 = arith.mulf %117, %116 : vector<16x16xf32>
    %119 = arith.addf %113, %118 : vector<16x16xf32>
    %c14 = arith.constant 14 : index
    %120 = memref.load %arg1[%c14] : memref<99xf32, #tpu.memory_space<smem>>
    %c0_56 = arith.constant 0 : index
    %c2_57 = arith.constant 2 : index
    %c0_58 = arith.constant 0 : index
    %121 = vector.load %arg4[%c0_56, %c2_57, %c0_58] : memref<2x22x22xf32, #tpu.memory_space<vmem>>, vector<1x16x16xf32>
    %122 = vector.shape_cast %121 : vector<1x16x16xf32> to vector<16x16xf32>
    %123 = vector.broadcast %120 : f32 to vector<16x16xf32>
    %124 = arith.mulf %123, %122 : vector<16x16xf32>
    %125 = arith.addf %119, %124 : vector<16x16xf32>
    %c15 = arith.constant 15 : index
    %126 = memref.load %arg1[%c15] : memref<99xf32, #tpu.memory_space<smem>>
    %c0_59 = arith.constant 0 : index
    %c2_60 = arith.constant 2 : index
    %c1_61 = arith.constant 1 : index
    %127 = vector.load %arg4[%c0_59, %c2_60, %c1_61] : memref<2x22x22xf32, #tpu.memory_space<vmem>>, vector<1x16x16xf32>
    %128 = vector.shape_cast %127 : vector<1x16x16xf32> to vector<16x16xf32>
    %129 = vector.broadcast %126 : f32 to vector<16x16xf32>
    %130 = arith.mulf %129, %128 : vector<16x16xf32>
    %131 = arith.addf %125, %130 : vector<16x16xf32>
    %c16 = arith.constant 16 : index
    %132 = memref.load %arg1[%c16] : memref<99xf32, #tpu.memory_space<smem>>
    %c0_62 = arith.constant 0 : index
    %c2_63 = arith.constant 2 : index
    %c2_64 = arith.constant 2 : index
    %133 = vector.load %arg4[%c0_62, %c2_63, %c2_64] : memref<2x22x22xf32, #tpu.memory_space<vmem>>, vector<1x16x16xf32>
    %134 = vector.shape_cast %133 : vector<1x16x16xf32> to vector<16x16xf32>
    %135 = vector.broadcast %132 : f32 to vector<16x16xf32>
    %136 = arith.mulf %135, %134 : vector<16x16xf32>
    %137 = arith.addf %131, %136 : vector<16x16xf32>
    %c17 = arith.constant 17 : index
    %138 = memref.load %arg1[%c17] : memref<99xf32, #tpu.memory_space<smem>>
    %c0_65 = arith.constant 0 : index
    %c2_66 = arith.constant 2 : index
    %c3_67 = arith.constant 3 : index
    %139 = vector.load %arg4[%c0_65, %c2_66, %c3_67] : memref<2x22x22xf32, #tpu.memory_space<vmem>>, vector<1x16x16xf32>
    %140 = vector.shape_cast %139 : vector<1x16x16xf32> to vector<16x16xf32>
    %141 = vector.broadcast %138 : f32 to vector<16x16xf32>
    %142 = arith.mulf %141, %140 : vector<16x16xf32>
    %143 = arith.addf %137, %142 : vector<16x16xf32>
    %c18 = arith.constant 18 : index
    %144 = memref.load %arg1[%c18] : memref<99xf32, #tpu.memory_space<smem>>
    %c0_68 = arith.constant 0 : index
    %c2_69 = arith.constant 2 : index
    %c4_70 = arith.constant 4 : index
    %145 = vector.load %arg4[%c0_68, %c2_69, %c4_70] : memref<2x22x22xf32, #tpu.memory_space<vmem>>, vector<1x16x16xf32>
    %146 = vector.shape_cast %145 : vector<1x16x16xf32> to vector<16x16xf32>
    %147 = vector.broadcast %144 : f32 to vector<16x16xf32>
    %148 = arith.mulf %147, %146 : vector<16x16xf32>
    %149 = arith.addf %143, %148 : vector<16x16xf32>
    %c19 = arith.constant 19 : index
    %150 = memref.load %arg1[%c19] : memref<99xf32, #tpu.memory_space<smem>>
    %c0_71 = arith.constant 0 : index
    %c2_72 = arith.constant 2 : index
    %c5_73 = arith.constant 5 : index
    %151 = vector.load %arg4[%c0_71, %c2_72, %c5_73] : memref<2x22x22xf32, #tpu.memory_space<vmem>>, vector<1x16x16xf32>
    %152 = vector.shape_cast %151 : vector<1x16x16xf32> to vector<16x16xf32>
    %153 = vector.broadcast %150 : f32 to vector<16x16xf32>
    %154 = arith.mulf %153, %152 : vector<16x16xf32>
    %155 = arith.addf %149, %154 : vector<16x16xf32>
    %c20 = arith.constant 20 : index
    %156 = memref.load %arg1[%c20] : memref<99xf32, #tpu.memory_space<smem>>
    %c0_74 = arith.constant 0 : index
    %c2_75 = arith.constant 2 : index
    %c6_76 = arith.constant 6 : index
    %157 = vector.load %arg4[%c0_74, %c2_75, %c6_76] : memref<2x22x22xf32, #tpu.memory_space<vmem>>, vector<1x16x16xf32>
    %158 = vector.shape_cast %157 : vector<1x16x16xf32> to vector<16x16xf32>
    %159 = vector.broadcast %156 : f32 to vector<16x16xf32>
    %160 = arith.mulf %159, %158 : vector<16x16xf32>
    %161 = arith.addf %155, %160 : vector<16x16xf32>
    %c21 = arith.constant 21 : index
    %162 = memref.load %arg1[%c21] : memref<99xf32, #tpu.memory_space<smem>>
    %c0_77 = arith.constant 0 : index
    %c3_78 = arith.constant 3 : index
    %c0_79 = arith.constant 0 : index
    %163 = vector.load %arg4[%c0_77, %c3_78, %c0_79] : memref<2x22x22xf32, #tpu.memory_space<vmem>>, vector<1x16x16xf32>
    %164 = vector.shape_cast %163 : vector<1x16x16xf32> to vector<16x16xf32>
    %165 = vector.broadcast %162 : f32 to vector<16x16xf32>
    %166 = arith.mulf %165, %164 : vector<16x16xf32>
    %167 = arith.addf %161, %166 : vector<16x16xf32>
    %c22 = arith.constant 22 : index
    %168 = memref.load %arg1[%c22] : memref<99xf32, #tpu.memory_space<smem>>
    %c0_80 = arith.constant 0 : index
    %c3_81 = arith.constant 3 : index
    %c1_82 = arith.constant 1 : index
    %169 = vector.load %arg4[%c0_80, %c3_81, %c1_82] : memref<2x22x22xf32, #tpu.memory_space<vmem>>, vector<1x16x16xf32>
    %170 = vector.shape_cast %169 : vector<1x16x16xf32> to vector<16x16xf32>
    %171 = vector.broadcast %168 : f32 to vector<16x16xf32>
    %172 = arith.mulf %171, %170 : vector<16x16xf32>
    %173 = arith.addf %167, %172 : vector<16x16xf32>
    %c23 = arith.constant 23 : index
    %174 = memref.load %arg1[%c23] : memref<99xf32, #tpu.memory_space<smem>>
    %c0_83 = arith.constant 0 : index
    %c3_84 = arith.constant 3 : index
    %c2_85 = arith.constant 2 : index
    %175 = vector.load %arg4[%c0_83, %c3_84, %c2_85] : memref<2x22x22xf32, #tpu.memory_space<vmem>>, vector<1x16x16xf32>
    %176 = vector.shape_cast %175 : vector<1x16x16xf32> to vector<16x16xf32>
    %177 = vector.broadcast %174 : f32 to vector<16x16xf32>
    %178 = arith.mulf %177, %176 : vector<16x16xf32>
    %179 = arith.addf %173, %178 : vector<16x16xf32>
    %c24 = arith.constant 24 : index
    %180 = memref.load %arg1[%c24] : memref<99xf32, #tpu.memory_space<smem>>
    %c0_86 = arith.constant 0 : index
    %c3_87 = arith.constant 3 : index
    %c3_88 = arith.constant 3 : index
    %181 = vector.load %arg4[%c0_86, %c3_87, %c3_88] : memref<2x22x22xf32, #tpu.memory_space<vmem>>, vector<1x16x16xf32>
    %182 = vector.shape_cast %181 : vector<1x16x16xf32> to vector<16x16xf32>
    %183 = vector.broadcast %180 : f32 to vector<16x16xf32>
    %184 = arith.mulf %183, %182 : vector<16x16xf32>
    %185 = arith.addf %179, %184 : vector<16x16xf32>
    %c25 = arith.constant 25 : index
    %186 = memref.load %arg1[%c25] : memref<99xf32, #tpu.memory_space<smem>>
    %c0_89 = arith.constant 0 : index
    %c3_90 = arith.constant 3 : index
    %c4_91 = arith.constant 4 : index
    %187 = vector.load %arg4[%c0_89, %c3_90, %c4_91] : memref<2x22x22xf32, #tpu.memory_space<vmem>>, vector<1x16x16xf32>
    %188 = vector.shape_cast %187 : vector<1x16x16xf32> to vector<16x16xf32>
    %189 = vector.broadcast %186 : f32 to vector<16x16xf32>
    %190 = arith.mulf %189, %188 : vector<16x16xf32>
    %191 = arith.addf %185, %190 : vector<16x16xf32>
    %c26 = arith.constant 26 : index
    %192 = memref.load %arg1[%c26] : memref<99xf32, #tpu.memory_space<smem>>
    %c0_92 = arith.constant 0 : index
    %c3_93 = arith.constant 3 : index
    %c5_94 = arith.constant 5 : index
    %193 = vector.load %arg4[%c0_92, %c3_93, %c5_94] : memref<2x22x22xf32, #tpu.memory_space<vmem>>, vector<1x16x16xf32>
    %194 = vector.shape_cast %193 : vector<1x16x16xf32> to vector<16x16xf32>
    %195 = vector.broadcast %192 : f32 to vector<16x16xf32>
    %196 = arith.mulf %195, %194 : vector<16x16xf32>
    %197 = arith.addf %191, %196 : vector<16x16xf32>
    %c27 = arith.constant 27 : index
    %198 = memref.load %arg1[%c27] : memref<99xf32, #tpu.memory_space<smem>>
    %c0_95 = arith.constant 0 : index
    %c3_96 = arith.constant 3 : index
    %c6_97 = arith.constant 6 : index
    %199 = vector.load %arg4[%c0_95, %c3_96, %c6_97] : memref<2x22x22xf32, #tpu.memory_space<vmem>>, vector<1x16x16xf32>
    %200 = vector.shape_cast %199 : vector<1x16x16xf32> to vector<16x16xf32>
    %201 = vector.broadcast %198 : f32 to vector<16x16xf32>
    %202 = arith.mulf %201, %200 : vector<16x16xf32>
    %203 = arith.addf %197, %202 : vector<16x16xf32>
    %c28 = arith.constant 28 : index
    %204 = memref.load %arg1[%c28] : memref<99xf32, #tpu.memory_space<smem>>
    %c0_98 = arith.constant 0 : index
    %c4_99 = arith.constant 4 : index
    %c0_100 = arith.constant 0 : index
    %205 = vector.load %arg4[%c0_98, %c4_99, %c0_100] : memref<2x22x22xf32, #tpu.memory_space<vmem>>, vector<1x16x16xf32>
    %206 = vector.shape_cast %205 : vector<1x16x16xf32> to vector<16x16xf32>
    %207 = vector.broadcast %204 : f32 to vector<16x16xf32>
    %208 = arith.mulf %207, %206 : vector<16x16xf32>
    %209 = arith.addf %203, %208 : vector<16x16xf32>
    %c29 = arith.constant 29 : index
    %210 = memref.load %arg1[%c29] : memref<99xf32, #tpu.memory_space<smem>>
    %c0_101 = arith.constant 0 : index
    %c4_102 = arith.constant 4 : index
    %c1_103 = arith.constant 1 : index
    %211 = vector.load %arg4[%c0_101, %c4_102, %c1_103] : memref<2x22x22xf32, #tpu.memory_space<vmem>>, vector<1x16x16xf32>
    %212 = vector.shape_cast %211 : vector<1x16x16xf32> to vector<16x16xf32>
    %213 = vector.broadcast %210 : f32 to vector<16x16xf32>
    %214 = arith.mulf %213, %212 : vector<16x16xf32>
    %215 = arith.addf %209, %214 : vector<16x16xf32>
    %c30 = arith.constant 30 : index
    %216 = memref.load %arg1[%c30] : memref<99xf32, #tpu.memory_space<smem>>
    %c0_104 = arith.constant 0 : index
    %c4_105 = arith.constant 4 : index
    %c2_106 = arith.constant 2 : index
    %217 = vector.load %arg4[%c0_104, %c4_105, %c2_106] : memref<2x22x22xf32, #tpu.memory_space<vmem>>, vector<1x16x16xf32>
    %218 = vector.shape_cast %217 : vector<1x16x16xf32> to vector<16x16xf32>
    %219 = vector.broadcast %216 : f32 to vector<16x16xf32>
    %220 = arith.mulf %219, %218 : vector<16x16xf32>
    %221 = arith.addf %215, %220 : vector<16x16xf32>
    %c31 = arith.constant 31 : index
    %222 = memref.load %arg1[%c31] : memref<99xf32, #tpu.memory_space<smem>>
    %c0_107 = arith.constant 0 : index
    %c4_108 = arith.constant 4 : index
    %c3_109 = arith.constant 3 : index
    %223 = vector.load %arg4[%c0_107, %c4_108, %c3_109] : memref<2x22x22xf32, #tpu.memory_space<vmem>>, vector<1x16x16xf32>
    %224 = vector.shape_cast %223 : vector<1x16x16xf32> to vector<16x16xf32>
    %225 = vector.broadcast %222 : f32 to vector<16x16xf32>
    %226 = arith.mulf %225, %224 : vector<16x16xf32>
    %227 = arith.addf %221, %226 : vector<16x16xf32>
    %c32 = arith.constant 32 : index
    %228 = memref.load %arg1[%c32] : memref<99xf32, #tpu.memory_space<smem>>
    %c0_110 = arith.constant 0 : index
    %c4_111 = arith.constant 4 : index
    %c4_112 = arith.constant 4 : index
    %229 = vector.load %arg4[%c0_110, %c4_111, %c4_112] : memref<2x22x22xf32, #tpu.memory_space<vmem>>, vector<1x16x16xf32>
    %230 = vector.shape_cast %229 : vector<1x16x16xf32> to vector<16x16xf32>
    %231 = vector.broadcast %228 : f32 to vector<16x16xf32>
    %232 = arith.mulf %231, %230 : vector<16x16xf32>
    %233 = arith.addf %227, %232 : vector<16x16xf32>
    %c33 = arith.constant 33 : index
    %234 = memref.load %arg1[%c33] : memref<99xf32, #tpu.memory_space<smem>>
    %c0_113 = arith.constant 0 : index
    %c4_114 = arith.constant 4 : index
    %c5_115 = arith.constant 5 : index
    %235 = vector.load %arg4[%c0_113, %c4_114, %c5_115] : memref<2x22x22xf32, #tpu.memory_space<vmem>>, vector<1x16x16xf32>
    %236 = vector.shape_cast %235 : vector<1x16x16xf32> to vector<16x16xf32>
    %237 = vector.broadcast %234 : f32 to vector<16x16xf32>
    %238 = arith.mulf %237, %236 : vector<16x16xf32>
    %239 = arith.addf %233, %238 : vector<16x16xf32>
    %c34 = arith.constant 34 : index
    %240 = memref.load %arg1[%c34] : memref<99xf32, #tpu.memory_space<smem>>
    %c0_116 = arith.constant 0 : index
    %c4_117 = arith.constant 4 : index
    %c6_118 = arith.constant 6 : index
    %241 = vector.load %arg4[%c0_116, %c4_117, %c6_118] : memref<2x22x22xf32, #tpu.memory_space<vmem>>, vector<1x16x16xf32>
    %242 = vector.shape_cast %241 : vector<1x16x16xf32> to vector<16x16xf32>
    %243 = vector.broadcast %240 : f32 to vector<16x16xf32>
    %244 = arith.mulf %243, %242 : vector<16x16xf32>
    %245 = arith.addf %239, %244 : vector<16x16xf32>
    %c35 = arith.constant 35 : index
    %246 = memref.load %arg1[%c35] : memref<99xf32, #tpu.memory_space<smem>>
    %c0_119 = arith.constant 0 : index
    %c5_120 = arith.constant 5 : index
    %c0_121 = arith.constant 0 : index
    %247 = vector.load %arg4[%c0_119, %c5_120, %c0_121] : memref<2x22x22xf32, #tpu.memory_space<vmem>>, vector<1x16x16xf32>
    %248 = vector.shape_cast %247 : vector<1x16x16xf32> to vector<16x16xf32>
    %249 = vector.broadcast %246 : f32 to vector<16x16xf32>
    %250 = arith.mulf %249, %248 : vector<16x16xf32>
    %251 = arith.addf %245, %250 : vector<16x16xf32>
    %c36 = arith.constant 36 : index
    %252 = memref.load %arg1[%c36] : memref<99xf32, #tpu.memory_space<smem>>
    %c0_122 = arith.constant 0 : index
    %c5_123 = arith.constant 5 : index
    %c1_124 = arith.constant 1 : index
    %253 = vector.load %arg4[%c0_122, %c5_123, %c1_124] : memref<2x22x22xf32, #tpu.memory_space<vmem>>, vector<1x16x16xf32>
    %254 = vector.shape_cast %253 : vector<1x16x16xf32> to vector<16x16xf32>
    %255 = vector.broadcast %252 : f32 to vector<16x16xf32>
    %256 = arith.mulf %255, %254 : vector<16x16xf32>
    %257 = arith.addf %251, %256 : vector<16x16xf32>
    %c37 = arith.constant 37 : index
    %258 = memref.load %arg1[%c37] : memref<99xf32, #tpu.memory_space<smem>>
    %c0_125 = arith.constant 0 : index
    %c5_126 = arith.constant 5 : index
    %c2_127 = arith.constant 2 : index
    %259 = vector.load %arg4[%c0_125, %c5_126, %c2_127] : memref<2x22x22xf32, #tpu.memory_space<vmem>>, vector<1x16x16xf32>
    %260 = vector.shape_cast %259 : vector<1x16x16xf32> to vector<16x16xf32>
    %261 = vector.broadcast %258 : f32 to vector<16x16xf32>
    %262 = arith.mulf %261, %260 : vector<16x16xf32>
    %263 = arith.addf %257, %262 : vector<16x16xf32>
    %c38 = arith.constant 38 : index
    %264 = memref.load %arg1[%c38] : memref<99xf32, #tpu.memory_space<smem>>
    %c0_128 = arith.constant 0 : index
    %c5_129 = arith.constant 5 : index
    %c3_130 = arith.constant 3 : index
    %265 = vector.load %arg4[%c0_128, %c5_129, %c3_130] : memref<2x22x22xf32, #tpu.memory_space<vmem>>, vector<1x16x16xf32>
    %266 = vector.shape_cast %265 : vector<1x16x16xf32> to vector<16x16xf32>
    %267 = vector.broadcast %264 : f32 to vector<16x16xf32>
    %268 = arith.mulf %267, %266 : vector<16x16xf32>
    %269 = arith.addf %263, %268 : vector<16x16xf32>
    %c39 = arith.constant 39 : index
    %270 = memref.load %arg1[%c39] : memref<99xf32, #tpu.memory_space<smem>>
    %c0_131 = arith.constant 0 : index
    %c5_132 = arith.constant 5 : index
    %c4_133 = arith.constant 4 : index
    %271 = vector.load %arg4[%c0_131, %c5_132, %c4_133] : memref<2x22x22xf32, #tpu.memory_space<vmem>>, vector<1x16x16xf32>
    %272 = vector.shape_cast %271 : vector<1x16x16xf32> to vector<16x16xf32>
    %273 = vector.broadcast %270 : f32 to vector<16x16xf32>
    %274 = arith.mulf %273, %272 : vector<16x16xf32>
    %275 = arith.addf %269, %274 : vector<16x16xf32>
    %c40 = arith.constant 40 : index
    %276 = memref.load %arg1[%c40] : memref<99xf32, #tpu.memory_space<smem>>
    %c0_134 = arith.constant 0 : index
    %c5_135 = arith.constant 5 : index
    %c5_136 = arith.constant 5 : index
    %277 = vector.load %arg4[%c0_134, %c5_135, %c5_136] : memref<2x22x22xf32, #tpu.memory_space<vmem>>, vector<1x16x16xf32>
    %278 = vector.shape_cast %277 : vector<1x16x16xf32> to vector<16x16xf32>
    %279 = vector.broadcast %276 : f32 to vector<16x16xf32>
    %280 = arith.mulf %279, %278 : vector<16x16xf32>
    %281 = arith.addf %275, %280 : vector<16x16xf32>
    %c41 = arith.constant 41 : index
    %282 = memref.load %arg1[%c41] : memref<99xf32, #tpu.memory_space<smem>>
    %c0_137 = arith.constant 0 : index
    %c5_138 = arith.constant 5 : index
    %c6_139 = arith.constant 6 : index
    %283 = vector.load %arg4[%c0_137, %c5_138, %c6_139] : memref<2x22x22xf32, #tpu.memory_space<vmem>>, vector<1x16x16xf32>
    %284 = vector.shape_cast %283 : vector<1x16x16xf32> to vector<16x16xf32>
    %285 = vector.broadcast %282 : f32 to vector<16x16xf32>
    %286 = arith.mulf %285, %284 : vector<16x16xf32>
    %287 = arith.addf %281, %286 : vector<16x16xf32>
    %c42 = arith.constant 42 : index
    %288 = memref.load %arg1[%c42] : memref<99xf32, #tpu.memory_space<smem>>
    %c0_140 = arith.constant 0 : index
    %c6_141 = arith.constant 6 : index
    %c0_142 = arith.constant 0 : index
    %289 = vector.load %arg4[%c0_140, %c6_141, %c0_142] : memref<2x22x22xf32, #tpu.memory_space<vmem>>, vector<1x16x16xf32>
    %290 = vector.shape_cast %289 : vector<1x16x16xf32> to vector<16x16xf32>
    %291 = vector.broadcast %288 : f32 to vector<16x16xf32>
    %292 = arith.mulf %291, %290 : vector<16x16xf32>
    %293 = arith.addf %287, %292 : vector<16x16xf32>
    %c43 = arith.constant 43 : index
    %294 = memref.load %arg1[%c43] : memref<99xf32, #tpu.memory_space<smem>>
    %c0_143 = arith.constant 0 : index
    %c6_144 = arith.constant 6 : index
    %c1_145 = arith.constant 1 : index
    %295 = vector.load %arg4[%c0_143, %c6_144, %c1_145] : memref<2x22x22xf32, #tpu.memory_space<vmem>>, vector<1x16x16xf32>
    %296 = vector.shape_cast %295 : vector<1x16x16xf32> to vector<16x16xf32>
    %297 = vector.broadcast %294 : f32 to vector<16x16xf32>
    %298 = arith.mulf %297, %296 : vector<16x16xf32>
    %299 = arith.addf %293, %298 : vector<16x16xf32>
    %c44 = arith.constant 44 : index
    %300 = memref.load %arg1[%c44] : memref<99xf32, #tpu.memory_space<smem>>
    %c0_146 = arith.constant 0 : index
    %c6_147 = arith.constant 6 : index
    %c2_148 = arith.constant 2 : index
    %301 = vector.load %arg4[%c0_146, %c6_147, %c2_148] : memref<2x22x22xf32, #tpu.memory_space<vmem>>, vector<1x16x16xf32>
    %302 = vector.shape_cast %301 : vector<1x16x16xf32> to vector<16x16xf32>
    %303 = vector.broadcast %300 : f32 to vector<16x16xf32>
    %304 = arith.mulf %303, %302 : vector<16x16xf32>
    %305 = arith.addf %299, %304 : vector<16x16xf32>
    %c45 = arith.constant 45 : index
    %306 = memref.load %arg1[%c45] : memref<99xf32, #tpu.memory_space<smem>>
    %c0_149 = arith.constant 0 : index
    %c6_150 = arith.constant 6 : index
    %c3_151 = arith.constant 3 : index
    %307 = vector.load %arg4[%c0_149, %c6_150, %c3_151] : memref<2x22x22xf32, #tpu.memory_space<vmem>>, vector<1x16x16xf32>
    %308 = vector.shape_cast %307 : vector<1x16x16xf32> to vector<16x16xf32>
    %309 = vector.broadcast %306 : f32 to vector<16x16xf32>
    %310 = arith.mulf %309, %308 : vector<16x16xf32>
    %311 = arith.addf %305, %310 : vector<16x16xf32>
    %c46 = arith.constant 46 : index
    %312 = memref.load %arg1[%c46] : memref<99xf32, #tpu.memory_space<smem>>
    %c0_152 = arith.constant 0 : index
    %c6_153 = arith.constant 6 : index
    %c4_154 = arith.constant 4 : index
    %313 = vector.load %arg4[%c0_152, %c6_153, %c4_154] : memref<2x22x22xf32, #tpu.memory_space<vmem>>, vector<1x16x16xf32>
    %314 = vector.shape_cast %313 : vector<1x16x16xf32> to vector<16x16xf32>
    %315 = vector.broadcast %312 : f32 to vector<16x16xf32>
    %316 = arith.mulf %315, %314 : vector<16x16xf32>
    %317 = arith.addf %311, %316 : vector<16x16xf32>
    %c47 = arith.constant 47 : index
    %318 = memref.load %arg1[%c47] : memref<99xf32, #tpu.memory_space<smem>>
    %c0_155 = arith.constant 0 : index
    %c6_156 = arith.constant 6 : index
    %c5_157 = arith.constant 5 : index
    %319 = vector.load %arg4[%c0_155, %c6_156, %c5_157] : memref<2x22x22xf32, #tpu.memory_space<vmem>>, vector<1x16x16xf32>
    %320 = vector.shape_cast %319 : vector<1x16x16xf32> to vector<16x16xf32>
    %321 = vector.broadcast %318 : f32 to vector<16x16xf32>
    %322 = arith.mulf %321, %320 : vector<16x16xf32>
    %323 = arith.addf %317, %322 : vector<16x16xf32>
    %c48 = arith.constant 48 : index
    %324 = memref.load %arg1[%c48] : memref<99xf32, #tpu.memory_space<smem>>
    %c0_158 = arith.constant 0 : index
    %c6_159 = arith.constant 6 : index
    %c6_160 = arith.constant 6 : index
    %325 = vector.load %arg4[%c0_158, %c6_159, %c6_160] : memref<2x22x22xf32, #tpu.memory_space<vmem>>, vector<1x16x16xf32>
    %326 = vector.shape_cast %325 : vector<1x16x16xf32> to vector<16x16xf32>
    %327 = vector.broadcast %324 : f32 to vector<16x16xf32>
    %328 = arith.mulf %327, %326 : vector<16x16xf32>
    %329 = arith.addf %323, %328 : vector<16x16xf32>
    %c49 = arith.constant 49 : index
    %330 = memref.load %arg1[%c49] : memref<99xf32, #tpu.memory_space<smem>>
    %c1_161 = arith.constant 1 : index
    %c0_162 = arith.constant 0 : index
    %c0_163 = arith.constant 0 : index
    %331 = vector.load %arg4[%c1_161, %c0_162, %c0_163] : memref<2x22x22xf32, #tpu.memory_space<vmem>>, vector<1x16x16xf32>
    %332 = vector.shape_cast %331 : vector<1x16x16xf32> to vector<16x16xf32>
    %333 = vector.broadcast %330 : f32 to vector<16x16xf32>
    %334 = arith.mulf %333, %332 : vector<16x16xf32>
    %335 = arith.addf %329, %334 : vector<16x16xf32>
    %c50 = arith.constant 50 : index
    %336 = memref.load %arg1[%c50] : memref<99xf32, #tpu.memory_space<smem>>
    %c1_164 = arith.constant 1 : index
    %c0_165 = arith.constant 0 : index
    %c1_166 = arith.constant 1 : index
    %337 = vector.load %arg4[%c1_164, %c0_165, %c1_166] : memref<2x22x22xf32, #tpu.memory_space<vmem>>, vector<1x16x16xf32>
    %338 = vector.shape_cast %337 : vector<1x16x16xf32> to vector<16x16xf32>
    %339 = vector.broadcast %336 : f32 to vector<16x16xf32>
    %340 = arith.mulf %339, %338 : vector<16x16xf32>
    %341 = arith.addf %335, %340 : vector<16x16xf32>
    %c51 = arith.constant 51 : index
    %342 = memref.load %arg1[%c51] : memref<99xf32, #tpu.memory_space<smem>>
    %c1_167 = arith.constant 1 : index
    %c0_168 = arith.constant 0 : index
    %c2_169 = arith.constant 2 : index
    %343 = vector.load %arg4[%c1_167, %c0_168, %c2_169] : memref<2x22x22xf32, #tpu.memory_space<vmem>>, vector<1x16x16xf32>
    %344 = vector.shape_cast %343 : vector<1x16x16xf32> to vector<16x16xf32>
    %345 = vector.broadcast %342 : f32 to vector<16x16xf32>
    %346 = arith.mulf %345, %344 : vector<16x16xf32>
    %347 = arith.addf %341, %346 : vector<16x16xf32>
    %c52 = arith.constant 52 : index
    %348 = memref.load %arg1[%c52] : memref<99xf32, #tpu.memory_space<smem>>
    %c1_170 = arith.constant 1 : index
    %c0_171 = arith.constant 0 : index
    %c3_172 = arith.constant 3 : index
    %349 = vector.load %arg4[%c1_170, %c0_171, %c3_172] : memref<2x22x22xf32, #tpu.memory_space<vmem>>, vector<1x16x16xf32>
    %350 = vector.shape_cast %349 : vector<1x16x16xf32> to vector<16x16xf32>
    %351 = vector.broadcast %348 : f32 to vector<16x16xf32>
    %352 = arith.mulf %351, %350 : vector<16x16xf32>
    %353 = arith.addf %347, %352 : vector<16x16xf32>
    %c53 = arith.constant 53 : index
    %354 = memref.load %arg1[%c53] : memref<99xf32, #tpu.memory_space<smem>>
    %c1_173 = arith.constant 1 : index
    %c0_174 = arith.constant 0 : index
    %c4_175 = arith.constant 4 : index
    %355 = vector.load %arg4[%c1_173, %c0_174, %c4_175] : memref<2x22x22xf32, #tpu.memory_space<vmem>>, vector<1x16x16xf32>
    %356 = vector.shape_cast %355 : vector<1x16x16xf32> to vector<16x16xf32>
    %357 = vector.broadcast %354 : f32 to vector<16x16xf32>
    %358 = arith.mulf %357, %356 : vector<16x16xf32>
    %359 = arith.addf %353, %358 : vector<16x16xf32>
    %c54 = arith.constant 54 : index
    %360 = memref.load %arg1[%c54] : memref<99xf32, #tpu.memory_space<smem>>
    %c1_176 = arith.constant 1 : index
    %c0_177 = arith.constant 0 : index
    %c5_178 = arith.constant 5 : index
    %361 = vector.load %arg4[%c1_176, %c0_177, %c5_178] : memref<2x22x22xf32, #tpu.memory_space<vmem>>, vector<1x16x16xf32>
    %362 = vector.shape_cast %361 : vector<1x16x16xf32> to vector<16x16xf32>
    %363 = vector.broadcast %360 : f32 to vector<16x16xf32>
    %364 = arith.mulf %363, %362 : vector<16x16xf32>
    %365 = arith.addf %359, %364 : vector<16x16xf32>
    %c55 = arith.constant 55 : index
    %366 = memref.load %arg1[%c55] : memref<99xf32, #tpu.memory_space<smem>>
    %c1_179 = arith.constant 1 : index
    %c0_180 = arith.constant 0 : index
    %c6_181 = arith.constant 6 : index
    %367 = vector.load %arg4[%c1_179, %c0_180, %c6_181] : memref<2x22x22xf32, #tpu.memory_space<vmem>>, vector<1x16x16xf32>
    %368 = vector.shape_cast %367 : vector<1x16x16xf32> to vector<16x16xf32>
    %369 = vector.broadcast %366 : f32 to vector<16x16xf32>
    %370 = arith.mulf %369, %368 : vector<16x16xf32>
    %371 = arith.addf %365, %370 : vector<16x16xf32>
    %c56 = arith.constant 56 : index
    %372 = memref.load %arg1[%c56] : memref<99xf32, #tpu.memory_space<smem>>
    %c1_182 = arith.constant 1 : index
    %c1_183 = arith.constant 1 : index
    %c0_184 = arith.constant 0 : index
    %373 = vector.load %arg4[%c1_182, %c1_183, %c0_184] : memref<2x22x22xf32, #tpu.memory_space<vmem>>, vector<1x16x16xf32>
    %374 = vector.shape_cast %373 : vector<1x16x16xf32> to vector<16x16xf32>
    %375 = vector.broadcast %372 : f32 to vector<16x16xf32>
    %376 = arith.mulf %375, %374 : vector<16x16xf32>
    %377 = arith.addf %371, %376 : vector<16x16xf32>
    %c57 = arith.constant 57 : index
    %378 = memref.load %arg1[%c57] : memref<99xf32, #tpu.memory_space<smem>>
    %c1_185 = arith.constant 1 : index
    %c1_186 = arith.constant 1 : index
    %c1_187 = arith.constant 1 : index
    %379 = vector.load %arg4[%c1_185, %c1_186, %c1_187] : memref<2x22x22xf32, #tpu.memory_space<vmem>>, vector<1x16x16xf32>
    %380 = vector.shape_cast %379 : vector<1x16x16xf32> to vector<16x16xf32>
    %381 = vector.broadcast %378 : f32 to vector<16x16xf32>
    %382 = arith.mulf %381, %380 : vector<16x16xf32>
    %383 = arith.addf %377, %382 : vector<16x16xf32>
    %c58 = arith.constant 58 : index
    %384 = memref.load %arg1[%c58] : memref<99xf32, #tpu.memory_space<smem>>
    %c1_188 = arith.constant 1 : index
    %c1_189 = arith.constant 1 : index
    %c2_190 = arith.constant 2 : index
    %385 = vector.load %arg4[%c1_188, %c1_189, %c2_190] : memref<2x22x22xf32, #tpu.memory_space<vmem>>, vector<1x16x16xf32>
    %386 = vector.shape_cast %385 : vector<1x16x16xf32> to vector<16x16xf32>
    %387 = vector.broadcast %384 : f32 to vector<16x16xf32>
    %388 = arith.mulf %387, %386 : vector<16x16xf32>
    %389 = arith.addf %383, %388 : vector<16x16xf32>
    %c59 = arith.constant 59 : index
    %390 = memref.load %arg1[%c59] : memref<99xf32, #tpu.memory_space<smem>>
    %c1_191 = arith.constant 1 : index
    %c1_192 = arith.constant 1 : index
    %c3_193 = arith.constant 3 : index
    %391 = vector.load %arg4[%c1_191, %c1_192, %c3_193] : memref<2x22x22xf32, #tpu.memory_space<vmem>>, vector<1x16x16xf32>
    %392 = vector.shape_cast %391 : vector<1x16x16xf32> to vector<16x16xf32>
    %393 = vector.broadcast %390 : f32 to vector<16x16xf32>
    %394 = arith.mulf %393, %392 : vector<16x16xf32>
    %395 = arith.addf %389, %394 : vector<16x16xf32>
    %c60 = arith.constant 60 : index
    %396 = memref.load %arg1[%c60] : memref<99xf32, #tpu.memory_space<smem>>
    %c1_194 = arith.constant 1 : index
    %c1_195 = arith.constant 1 : index
    %c4_196 = arith.constant 4 : index
    %397 = vector.load %arg4[%c1_194, %c1_195, %c4_196] : memref<2x22x22xf32, #tpu.memory_space<vmem>>, vector<1x16x16xf32>
    %398 = vector.shape_cast %397 : vector<1x16x16xf32> to vector<16x16xf32>
    %399 = vector.broadcast %396 : f32 to vector<16x16xf32>
    %400 = arith.mulf %399, %398 : vector<16x16xf32>
    %401 = arith.addf %395, %400 : vector<16x16xf32>
    %c61 = arith.constant 61 : index
    %402 = memref.load %arg1[%c61] : memref<99xf32, #tpu.memory_space<smem>>
    %c1_197 = arith.constant 1 : index
    %c1_198 = arith.constant 1 : index
    %c5_199 = arith.constant 5 : index
    %403 = vector.load %arg4[%c1_197, %c1_198, %c5_199] : memref<2x22x22xf32, #tpu.memory_space<vmem>>, vector<1x16x16xf32>
    %404 = vector.shape_cast %403 : vector<1x16x16xf32> to vector<16x16xf32>
    %405 = vector.broadcast %402 : f32 to vector<16x16xf32>
    %406 = arith.mulf %405, %404 : vector<16x16xf32>
    %407 = arith.addf %401, %406 : vector<16x16xf32>
    %c62 = arith.constant 62 : index
    %408 = memref.load %arg1[%c62] : memref<99xf32, #tpu.memory_space<smem>>
    %c1_200 = arith.constant 1 : index
    %c1_201 = arith.constant 1 : index
    %c6_202 = arith.constant 6 : index
    %409 = vector.load %arg4[%c1_200, %c1_201, %c6_202] : memref<2x22x22xf32, #tpu.memory_space<vmem>>, vector<1x16x16xf32>
    %410 = vector.shape_cast %409 : vector<1x16x16xf32> to vector<16x16xf32>
    %411 = vector.broadcast %408 : f32 to vector<16x16xf32>
    %412 = arith.mulf %411, %410 : vector<16x16xf32>
    %413 = arith.addf %407, %412 : vector<16x16xf32>
    %c63 = arith.constant 63 : index
    %414 = memref.load %arg1[%c63] : memref<99xf32, #tpu.memory_space<smem>>
    %c1_203 = arith.constant 1 : index
    %c2_204 = arith.constant 2 : index
    %c0_205 = arith.constant 0 : index
    %415 = vector.load %arg4[%c1_203, %c2_204, %c0_205] : memref<2x22x22xf32, #tpu.memory_space<vmem>>, vector<1x16x16xf32>
    %416 = vector.shape_cast %415 : vector<1x16x16xf32> to vector<16x16xf32>
    %417 = vector.broadcast %414 : f32 to vector<16x16xf32>
    %418 = arith.mulf %417, %416 : vector<16x16xf32>
    %419 = arith.addf %413, %418 : vector<16x16xf32>
    %c64 = arith.constant 64 : index
    %420 = memref.load %arg1[%c64] : memref<99xf32, #tpu.memory_space<smem>>
    %c1_206 = arith.constant 1 : index
    %c2_207 = arith.constant 2 : index
    %c1_208 = arith.constant 1 : index
    %421 = vector.load %arg4[%c1_206, %c2_207, %c1_208] : memref<2x22x22xf32, #tpu.memory_space<vmem>>, vector<1x16x16xf32>
    %422 = vector.shape_cast %421 : vector<1x16x16xf32> to vector<16x16xf32>
    %423 = vector.broadcast %420 : f32 to vector<16x16xf32>
    %424 = arith.mulf %423, %422 : vector<16x16xf32>
    %425 = arith.addf %419, %424 : vector<16x16xf32>
    %c65 = arith.constant 65 : index
    %426 = memref.load %arg1[%c65] : memref<99xf32, #tpu.memory_space<smem>>
    %c1_209 = arith.constant 1 : index
    %c2_210 = arith.constant 2 : index
    %c2_211 = arith.constant 2 : index
    %427 = vector.load %arg4[%c1_209, %c2_210, %c2_211] : memref<2x22x22xf32, #tpu.memory_space<vmem>>, vector<1x16x16xf32>
    %428 = vector.shape_cast %427 : vector<1x16x16xf32> to vector<16x16xf32>
    %429 = vector.broadcast %426 : f32 to vector<16x16xf32>
    %430 = arith.mulf %429, %428 : vector<16x16xf32>
    %431 = arith.addf %425, %430 : vector<16x16xf32>
    %c66 = arith.constant 66 : index
    %432 = memref.load %arg1[%c66] : memref<99xf32, #tpu.memory_space<smem>>
    %c1_212 = arith.constant 1 : index
    %c2_213 = arith.constant 2 : index
    %c3_214 = arith.constant 3 : index
    %433 = vector.load %arg4[%c1_212, %c2_213, %c3_214] : memref<2x22x22xf32, #tpu.memory_space<vmem>>, vector<1x16x16xf32>
    %434 = vector.shape_cast %433 : vector<1x16x16xf32> to vector<16x16xf32>
    %435 = vector.broadcast %432 : f32 to vector<16x16xf32>
    %436 = arith.mulf %435, %434 : vector<16x16xf32>
    %437 = arith.addf %431, %436 : vector<16x16xf32>
    %c67 = arith.constant 67 : index
    %438 = memref.load %arg1[%c67] : memref<99xf32, #tpu.memory_space<smem>>
    %c1_215 = arith.constant 1 : index
    %c2_216 = arith.constant 2 : index
    %c4_217 = arith.constant 4 : index
    %439 = vector.load %arg4[%c1_215, %c2_216, %c4_217] : memref<2x22x22xf32, #tpu.memory_space<vmem>>, vector<1x16x16xf32>
    %440 = vector.shape_cast %439 : vector<1x16x16xf32> to vector<16x16xf32>
    %441 = vector.broadcast %438 : f32 to vector<16x16xf32>
    %442 = arith.mulf %441, %440 : vector<16x16xf32>
    %443 = arith.addf %437, %442 : vector<16x16xf32>
    %c68 = arith.constant 68 : index
    %444 = memref.load %arg1[%c68] : memref<99xf32, #tpu.memory_space<smem>>
    %c1_218 = arith.constant 1 : index
    %c2_219 = arith.constant 2 : index
    %c5_220 = arith.constant 5 : index
    %445 = vector.load %arg4[%c1_218, %c2_219, %c5_220] : memref<2x22x22xf32, #tpu.memory_space<vmem>>, vector<1x16x16xf32>
    %446 = vector.shape_cast %445 : vector<1x16x16xf32> to vector<16x16xf32>
    %447 = vector.broadcast %444 : f32 to vector<16x16xf32>
    %448 = arith.mulf %447, %446 : vector<16x16xf32>
    %449 = arith.addf %443, %448 : vector<16x16xf32>
    %c69 = arith.constant 69 : index
    %450 = memref.load %arg1[%c69] : memref<99xf32, #tpu.memory_space<smem>>
    %c1_221 = arith.constant 1 : index
    %c2_222 = arith.constant 2 : index
    %c6_223 = arith.constant 6 : index
    %451 = vector.load %arg4[%c1_221, %c2_222, %c6_223] : memref<2x22x22xf32, #tpu.memory_space<vmem>>, vector<1x16x16xf32>
    %452 = vector.shape_cast %451 : vector<1x16x16xf32> to vector<16x16xf32>
    %453 = vector.broadcast %450 : f32 to vector<16x16xf32>
    %454 = arith.mulf %453, %452 : vector<16x16xf32>
    %455 = arith.addf %449, %454 : vector<16x16xf32>
    %c70 = arith.constant 70 : index
    %456 = memref.load %arg1[%c70] : memref<99xf32, #tpu.memory_space<smem>>
    %c1_224 = arith.constant 1 : index
    %c3_225 = arith.constant 3 : index
    %c0_226 = arith.constant 0 : index
    %457 = vector.load %arg4[%c1_224, %c3_225, %c0_226] : memref<2x22x22xf32, #tpu.memory_space<vmem>>, vector<1x16x16xf32>
    %458 = vector.shape_cast %457 : vector<1x16x16xf32> to vector<16x16xf32>
    %459 = vector.broadcast %456 : f32 to vector<16x16xf32>
    %460 = arith.mulf %459, %458 : vector<16x16xf32>
    %461 = arith.addf %455, %460 : vector<16x16xf32>
    %c71 = arith.constant 71 : index
    %462 = memref.load %arg1[%c71] : memref<99xf32, #tpu.memory_space<smem>>
    %c1_227 = arith.constant 1 : index
    %c3_228 = arith.constant 3 : index
    %c1_229 = arith.constant 1 : index
    %463 = vector.load %arg4[%c1_227, %c3_228, %c1_229] : memref<2x22x22xf32, #tpu.memory_space<vmem>>, vector<1x16x16xf32>
    %464 = vector.shape_cast %463 : vector<1x16x16xf32> to vector<16x16xf32>
    %465 = vector.broadcast %462 : f32 to vector<16x16xf32>
    %466 = arith.mulf %465, %464 : vector<16x16xf32>
    %467 = arith.addf %461, %466 : vector<16x16xf32>
    %c72 = arith.constant 72 : index
    %468 = memref.load %arg1[%c72] : memref<99xf32, #tpu.memory_space<smem>>
    %c1_230 = arith.constant 1 : index
    %c3_231 = arith.constant 3 : index
    %c2_232 = arith.constant 2 : index
    %469 = vector.load %arg4[%c1_230, %c3_231, %c2_232] : memref<2x22x22xf32, #tpu.memory_space<vmem>>, vector<1x16x16xf32>
    %470 = vector.shape_cast %469 : vector<1x16x16xf32> to vector<16x16xf32>
    %471 = vector.broadcast %468 : f32 to vector<16x16xf32>
    %472 = arith.mulf %471, %470 : vector<16x16xf32>
    %473 = arith.addf %467, %472 : vector<16x16xf32>
    %c73 = arith.constant 73 : index
    %474 = memref.load %arg1[%c73] : memref<99xf32, #tpu.memory_space<smem>>
    %c1_233 = arith.constant 1 : index
    %c3_234 = arith.constant 3 : index
    %c3_235 = arith.constant 3 : index
    %475 = vector.load %arg4[%c1_233, %c3_234, %c3_235] : memref<2x22x22xf32, #tpu.memory_space<vmem>>, vector<1x16x16xf32>
    %476 = vector.shape_cast %475 : vector<1x16x16xf32> to vector<16x16xf32>
    %477 = vector.broadcast %474 : f32 to vector<16x16xf32>
    %478 = arith.mulf %477, %476 : vector<16x16xf32>
    %479 = arith.addf %473, %478 : vector<16x16xf32>
    %c74 = arith.constant 74 : index
    %480 = memref.load %arg1[%c74] : memref<99xf32, #tpu.memory_space<smem>>
    %c1_236 = arith.constant 1 : index
    %c3_237 = arith.constant 3 : index
    %c4_238 = arith.constant 4 : index
    %481 = vector.load %arg4[%c1_236, %c3_237, %c4_238] : memref<2x22x22xf32, #tpu.memory_space<vmem>>, vector<1x16x16xf32>
    %482 = vector.shape_cast %481 : vector<1x16x16xf32> to vector<16x16xf32>
    %483 = vector.broadcast %480 : f32 to vector<16x16xf32>
    %484 = arith.mulf %483, %482 : vector<16x16xf32>
    %485 = arith.addf %479, %484 : vector<16x16xf32>
    %c75 = arith.constant 75 : index
    %486 = memref.load %arg1[%c75] : memref<99xf32, #tpu.memory_space<smem>>
    %c1_239 = arith.constant 1 : index
    %c3_240 = arith.constant 3 : index
    %c5_241 = arith.constant 5 : index
    %487 = vector.load %arg4[%c1_239, %c3_240, %c5_241] : memref<2x22x22xf32, #tpu.memory_space<vmem>>, vector<1x16x16xf32>
    %488 = vector.shape_cast %487 : vector<1x16x16xf32> to vector<16x16xf32>
    %489 = vector.broadcast %486 : f32 to vector<16x16xf32>
    %490 = arith.mulf %489, %488 : vector<16x16xf32>
    %491 = arith.addf %485, %490 : vector<16x16xf32>
    %c76 = arith.constant 76 : index
    %492 = memref.load %arg1[%c76] : memref<99xf32, #tpu.memory_space<smem>>
    %c1_242 = arith.constant 1 : index
    %c3_243 = arith.constant 3 : index
    %c6_244 = arith.constant 6 : index
    %493 = vector.load %arg4[%c1_242, %c3_243, %c6_244] : memref<2x22x22xf32, #tpu.memory_space<vmem>>, vector<1x16x16xf32>
    %494 = vector.shape_cast %493 : vector<1x16x16xf32> to vector<16x16xf32>
    %495 = vector.broadcast %492 : f32 to vector<16x16xf32>
    %496 = arith.mulf %495, %494 : vector<16x16xf32>
    %497 = arith.addf %491, %496 : vector<16x16xf32>
    %c77 = arith.constant 77 : index
    %498 = memref.load %arg1[%c77] : memref<99xf32, #tpu.memory_space<smem>>
    %c1_245 = arith.constant 1 : index
    %c4_246 = arith.constant 4 : index
    %c0_247 = arith.constant 0 : index
    %499 = vector.load %arg4[%c1_245, %c4_246, %c0_247] : memref<2x22x22xf32, #tpu.memory_space<vmem>>, vector<1x16x16xf32>
    %500 = vector.shape_cast %499 : vector<1x16x16xf32> to vector<16x16xf32>
    %501 = vector.broadcast %498 : f32 to vector<16x16xf32>
    %502 = arith.mulf %501, %500 : vector<16x16xf32>
    %503 = arith.addf %497, %502 : vector<16x16xf32>
    %c78 = arith.constant 78 : index
    %504 = memref.load %arg1[%c78] : memref<99xf32, #tpu.memory_space<smem>>
    %c1_248 = arith.constant 1 : index
    %c4_249 = arith.constant 4 : index
    %c1_250 = arith.constant 1 : index
    %505 = vector.load %arg4[%c1_248, %c4_249, %c1_250] : memref<2x22x22xf32, #tpu.memory_space<vmem>>, vector<1x16x16xf32>
    %506 = vector.shape_cast %505 : vector<1x16x16xf32> to vector<16x16xf32>
    %507 = vector.broadcast %504 : f32 to vector<16x16xf32>
    %508 = arith.mulf %507, %506 : vector<16x16xf32>
    %509 = arith.addf %503, %508 : vector<16x16xf32>
    %c79 = arith.constant 79 : index
    %510 = memref.load %arg1[%c79] : memref<99xf32, #tpu.memory_space<smem>>
    %c1_251 = arith.constant 1 : index
    %c4_252 = arith.constant 4 : index
    %c2_253 = arith.constant 2 : index
    %511 = vector.load %arg4[%c1_251, %c4_252, %c2_253] : memref<2x22x22xf32, #tpu.memory_space<vmem>>, vector<1x16x16xf32>
    %512 = vector.shape_cast %511 : vector<1x16x16xf32> to vector<16x16xf32>
    %513 = vector.broadcast %510 : f32 to vector<16x16xf32>
    %514 = arith.mulf %513, %512 : vector<16x16xf32>
    %515 = arith.addf %509, %514 : vector<16x16xf32>
    %c80 = arith.constant 80 : index
    %516 = memref.load %arg1[%c80] : memref<99xf32, #tpu.memory_space<smem>>
    %c1_254 = arith.constant 1 : index
    %c4_255 = arith.constant 4 : index
    %c3_256 = arith.constant 3 : index
    %517 = vector.load %arg4[%c1_254, %c4_255, %c3_256] : memref<2x22x22xf32, #tpu.memory_space<vmem>>, vector<1x16x16xf32>
    %518 = vector.shape_cast %517 : vector<1x16x16xf32> to vector<16x16xf32>
    %519 = vector.broadcast %516 : f32 to vector<16x16xf32>
    %520 = arith.mulf %519, %518 : vector<16x16xf32>
    %521 = arith.addf %515, %520 : vector<16x16xf32>
    %c81 = arith.constant 81 : index
    %522 = memref.load %arg1[%c81] : memref<99xf32, #tpu.memory_space<smem>>
    %c1_257 = arith.constant 1 : index
    %c4_258 = arith.constant 4 : index
    %c4_259 = arith.constant 4 : index
    %523 = vector.load %arg4[%c1_257, %c4_258, %c4_259] : memref<2x22x22xf32, #tpu.memory_space<vmem>>, vector<1x16x16xf32>
    %524 = vector.shape_cast %523 : vector<1x16x16xf32> to vector<16x16xf32>
    %525 = vector.broadcast %522 : f32 to vector<16x16xf32>
    %526 = arith.mulf %525, %524 : vector<16x16xf32>
    %527 = arith.addf %521, %526 : vector<16x16xf32>
    %c82 = arith.constant 82 : index
    %528 = memref.load %arg1[%c82] : memref<99xf32, #tpu.memory_space<smem>>
    %c1_260 = arith.constant 1 : index
    %c4_261 = arith.constant 4 : index
    %c5_262 = arith.constant 5 : index
    %529 = vector.load %arg4[%c1_260, %c4_261, %c5_262] : memref<2x22x22xf32, #tpu.memory_space<vmem>>, vector<1x16x16xf32>
    %530 = vector.shape_cast %529 : vector<1x16x16xf32> to vector<16x16xf32>
    %531 = vector.broadcast %528 : f32 to vector<16x16xf32>
    %532 = arith.mulf %531, %530 : vector<16x16xf32>
    %533 = arith.addf %527, %532 : vector<16x16xf32>
    %c83 = arith.constant 83 : index
    %534 = memref.load %arg1[%c83] : memref<99xf32, #tpu.memory_space<smem>>
    %c1_263 = arith.constant 1 : index
    %c4_264 = arith.constant 4 : index
    %c6_265 = arith.constant 6 : index
    %535 = vector.load %arg4[%c1_263, %c4_264, %c6_265] : memref<2x22x22xf32, #tpu.memory_space<vmem>>, vector<1x16x16xf32>
    %536 = vector.shape_cast %535 : vector<1x16x16xf32> to vector<16x16xf32>
    %537 = vector.broadcast %534 : f32 to vector<16x16xf32>
    %538 = arith.mulf %537, %536 : vector<16x16xf32>
    %539 = arith.addf %533, %538 : vector<16x16xf32>
    %c84 = arith.constant 84 : index
    %540 = memref.load %arg1[%c84] : memref<99xf32, #tpu.memory_space<smem>>
    %c1_266 = arith.constant 1 : index
    %c5_267 = arith.constant 5 : index
    %c0_268 = arith.constant 0 : index
    %541 = vector.load %arg4[%c1_266, %c5_267, %c0_268] : memref<2x22x22xf32, #tpu.memory_space<vmem>>, vector<1x16x16xf32>
    %542 = vector.shape_cast %541 : vector<1x16x16xf32> to vector<16x16xf32>
    %543 = vector.broadcast %540 : f32 to vector<16x16xf32>
    %544 = arith.mulf %543, %542 : vector<16x16xf32>
    %545 = arith.addf %539, %544 : vector<16x16xf32>
    %c85 = arith.constant 85 : index
    %546 = memref.load %arg1[%c85] : memref<99xf32, #tpu.memory_space<smem>>
    %c1_269 = arith.constant 1 : index
    %c5_270 = arith.constant 5 : index
    %c1_271 = arith.constant 1 : index
    %547 = vector.load %arg4[%c1_269, %c5_270, %c1_271] : memref<2x22x22xf32, #tpu.memory_space<vmem>>, vector<1x16x16xf32>
    %548 = vector.shape_cast %547 : vector<1x16x16xf32> to vector<16x16xf32>
    %549 = vector.broadcast %546 : f32 to vector<16x16xf32>
    %550 = arith.mulf %549, %548 : vector<16x16xf32>
    %551 = arith.addf %545, %550 : vector<16x16xf32>
    %c86 = arith.constant 86 : index
    %552 = memref.load %arg1[%c86] : memref<99xf32, #tpu.memory_space<smem>>
    %c1_272 = arith.constant 1 : index
    %c5_273 = arith.constant 5 : index
    %c2_274 = arith.constant 2 : index
    %553 = vector.load %arg4[%c1_272, %c5_273, %c2_274] : memref<2x22x22xf32, #tpu.memory_space<vmem>>, vector<1x16x16xf32>
    %554 = vector.shape_cast %553 : vector<1x16x16xf32> to vector<16x16xf32>
    %555 = vector.broadcast %552 : f32 to vector<16x16xf32>
    %556 = arith.mulf %555, %554 : vector<16x16xf32>
    %557 = arith.addf %551, %556 : vector<16x16xf32>
    %c87 = arith.constant 87 : index
    %558 = memref.load %arg1[%c87] : memref<99xf32, #tpu.memory_space<smem>>
    %c1_275 = arith.constant 1 : index
    %c5_276 = arith.constant 5 : index
    %c3_277 = arith.constant 3 : index
    %559 = vector.load %arg4[%c1_275, %c5_276, %c3_277] : memref<2x22x22xf32, #tpu.memory_space<vmem>>, vector<1x16x16xf32>
    %560 = vector.shape_cast %559 : vector<1x16x16xf32> to vector<16x16xf32>
    %561 = vector.broadcast %558 : f32 to vector<16x16xf32>
    %562 = arith.mulf %561, %560 : vector<16x16xf32>
    %563 = arith.addf %557, %562 : vector<16x16xf32>
    %c88 = arith.constant 88 : index
    %564 = memref.load %arg1[%c88] : memref<99xf32, #tpu.memory_space<smem>>
    %c1_278 = arith.constant 1 : index
    %c5_279 = arith.constant 5 : index
    %c4_280 = arith.constant 4 : index
    %565 = vector.load %arg4[%c1_278, %c5_279, %c4_280] : memref<2x22x22xf32, #tpu.memory_space<vmem>>, vector<1x16x16xf32>
    %566 = vector.shape_cast %565 : vector<1x16x16xf32> to vector<16x16xf32>
    %567 = vector.broadcast %564 : f32 to vector<16x16xf32>
    %568 = arith.mulf %567, %566 : vector<16x16xf32>
    %569 = arith.addf %563, %568 : vector<16x16xf32>
    %c89 = arith.constant 89 : index
    %570 = memref.load %arg1[%c89] : memref<99xf32, #tpu.memory_space<smem>>
    %c1_281 = arith.constant 1 : index
    %c5_282 = arith.constant 5 : index
    %c5_283 = arith.constant 5 : index
    %571 = vector.load %arg4[%c1_281, %c5_282, %c5_283] : memref<2x22x22xf32, #tpu.memory_space<vmem>>, vector<1x16x16xf32>
    %572 = vector.shape_cast %571 : vector<1x16x16xf32> to vector<16x16xf32>
    %573 = vector.broadcast %570 : f32 to vector<16x16xf32>
    %574 = arith.mulf %573, %572 : vector<16x16xf32>
    %575 = arith.addf %569, %574 : vector<16x16xf32>
    %c90 = arith.constant 90 : index
    %576 = memref.load %arg1[%c90] : memref<99xf32, #tpu.memory_space<smem>>
    %c1_284 = arith.constant 1 : index
    %c5_285 = arith.constant 5 : index
    %c6_286 = arith.constant 6 : index
    %577 = vector.load %arg4[%c1_284, %c5_285, %c6_286] : memref<2x22x22xf32, #tpu.memory_space<vmem>>, vector<1x16x16xf32>
    %578 = vector.shape_cast %577 : vector<1x16x16xf32> to vector<16x16xf32>
    %579 = vector.broadcast %576 : f32 to vector<16x16xf32>
    %580 = arith.mulf %579, %578 : vector<16x16xf32>
    %581 = arith.addf %575, %580 : vector<16x16xf32>
    %c91 = arith.constant 91 : index
    %582 = memref.load %arg1[%c91] : memref<99xf32, #tpu.memory_space<smem>>
    %c1_287 = arith.constant 1 : index
    %c6_288 = arith.constant 6 : index
    %c0_289 = arith.constant 0 : index
    %583 = vector.load %arg4[%c1_287, %c6_288, %c0_289] : memref<2x22x22xf32, #tpu.memory_space<vmem>>, vector<1x16x16xf32>
    %584 = vector.shape_cast %583 : vector<1x16x16xf32> to vector<16x16xf32>
    %585 = vector.broadcast %582 : f32 to vector<16x16xf32>
    %586 = arith.mulf %585, %584 : vector<16x16xf32>
    %587 = arith.addf %581, %586 : vector<16x16xf32>
    %c92 = arith.constant 92 : index
    %588 = memref.load %arg1[%c92] : memref<99xf32, #tpu.memory_space<smem>>
    %c1_290 = arith.constant 1 : index
    %c6_291 = arith.constant 6 : index
    %c1_292 = arith.constant 1 : index
    %589 = vector.load %arg4[%c1_290, %c6_291, %c1_292] : memref<2x22x22xf32, #tpu.memory_space<vmem>>, vector<1x16x16xf32>
    %590 = vector.shape_cast %589 : vector<1x16x16xf32> to vector<16x16xf32>
    %591 = vector.broadcast %588 : f32 to vector<16x16xf32>
    %592 = arith.mulf %591, %590 : vector<16x16xf32>
    %593 = arith.addf %587, %592 : vector<16x16xf32>
    %c93 = arith.constant 93 : index
    %594 = memref.load %arg1[%c93] : memref<99xf32, #tpu.memory_space<smem>>
    %c1_293 = arith.constant 1 : index
    %c6_294 = arith.constant 6 : index
    %c2_295 = arith.constant 2 : index
    %595 = vector.load %arg4[%c1_293, %c6_294, %c2_295] : memref<2x22x22xf32, #tpu.memory_space<vmem>>, vector<1x16x16xf32>
    %596 = vector.shape_cast %595 : vector<1x16x16xf32> to vector<16x16xf32>
    %597 = vector.broadcast %594 : f32 to vector<16x16xf32>
    %598 = arith.mulf %597, %596 : vector<16x16xf32>
    %599 = arith.addf %593, %598 : vector<16x16xf32>
    %c94 = arith.constant 94 : index
    %600 = memref.load %arg1[%c94] : memref<99xf32, #tpu.memory_space<smem>>
    %c1_296 = arith.constant 1 : index
    %c6_297 = arith.constant 6 : index
    %c3_298 = arith.constant 3 : index
    %601 = vector.load %arg4[%c1_296, %c6_297, %c3_298] : memref<2x22x22xf32, #tpu.memory_space<vmem>>, vector<1x16x16xf32>
    %602 = vector.shape_cast %601 : vector<1x16x16xf32> to vector<16x16xf32>
    %603 = vector.broadcast %600 : f32 to vector<16x16xf32>
    %604 = arith.mulf %603, %602 : vector<16x16xf32>
    %605 = arith.addf %599, %604 : vector<16x16xf32>
    %c95 = arith.constant 95 : index
    %606 = memref.load %arg1[%c95] : memref<99xf32, #tpu.memory_space<smem>>
    %c1_299 = arith.constant 1 : index
    %c6_300 = arith.constant 6 : index
    %c4_301 = arith.constant 4 : index
    %607 = vector.load %arg4[%c1_299, %c6_300, %c4_301] : memref<2x22x22xf32, #tpu.memory_space<vmem>>, vector<1x16x16xf32>
    %608 = vector.shape_cast %607 : vector<1x16x16xf32> to vector<16x16xf32>
    %609 = vector.broadcast %606 : f32 to vector<16x16xf32>
    %610 = arith.mulf %609, %608 : vector<16x16xf32>
    %611 = arith.addf %605, %610 : vector<16x16xf32>
    %c96 = arith.constant 96 : index
    %612 = memref.load %arg1[%c96] : memref<99xf32, #tpu.memory_space<smem>>
    %c1_302 = arith.constant 1 : index
    %c6_303 = arith.constant 6 : index
    %c5_304 = arith.constant 5 : index
    %613 = vector.load %arg4[%c1_302, %c6_303, %c5_304] : memref<2x22x22xf32, #tpu.memory_space<vmem>>, vector<1x16x16xf32>
    %614 = vector.shape_cast %613 : vector<1x16x16xf32> to vector<16x16xf32>
    %615 = vector.broadcast %612 : f32 to vector<16x16xf32>
    %616 = arith.mulf %615, %614 : vector<16x16xf32>
    %617 = arith.addf %611, %616 : vector<16x16xf32>
    %c97 = arith.constant 97 : index
    %618 = memref.load %arg1[%c97] : memref<99xf32, #tpu.memory_space<smem>>
    %c1_305 = arith.constant 1 : index
    %c6_306 = arith.constant 6 : index
    %c6_307 = arith.constant 6 : index
    %619 = vector.load %arg4[%c1_305, %c6_306, %c6_307] : memref<2x22x22xf32, #tpu.memory_space<vmem>>, vector<1x16x16xf32>
    %620 = vector.shape_cast %619 : vector<1x16x16xf32> to vector<16x16xf32>
    %621 = vector.broadcast %618 : f32 to vector<16x16xf32>
    %622 = arith.mulf %621, %620 : vector<16x16xf32>
    %623 = arith.addf %617, %622 : vector<16x16xf32>
    %cst_308 = arith.constant 0.000000e+00 : f32
    %624 = vector.broadcast %cst_308 : f32 to vector<16x16xf32>
    %625 = arith.subf %624, %623 : vector<16x16xf32>
    %626 = math.exp %625 : vector<16x16xf32>
    %cst_309 = arith.constant 1.000000e+00 : f32
    %627 = vector.broadcast %cst_309 : f32 to vector<16x16xf32>
    %628 = arith.addf %627, %626 : vector<16x16xf32>
    %cst_310 = arith.constant 1.000000e+00 : f32
    %629 = vector.broadcast %cst_310 : f32 to vector<16x16xf32>
    %630 = arith.divf %629, %628 : vector<16x16xf32>
    %631 = vector.shape_cast %630 : vector<16x16xf32> to vector<1x16x16xf32>
    %632 = vector.broadcast %631 : vector<1x16x16xf32> to vector<4x16x16xf32>
    %633 = arith.mulf %1, %632 : vector<4x16x16xf32>
    %c0_311 = arith.constant 0 : index
    %c0_312 = arith.constant 0 : index
    %c0_313 = arith.constant 0 : index
    %c0_314 = arith.constant 0 : index
    %634 = vector.load %arg3[%c0_311, %c0_312, %c0_313, %c0_314] : memref<1x4x16x16xf32, #tpu.memory_space<vmem>>, vector<1x4x16x16xf32>
    %635 = vector.shape_cast %634 : vector<1x4x16x16xf32> to vector<4x16x16xf32>
    %636 = vector.shape_cast %633 : vector<4x16x16xf32> to vector<1x4x16x16xf32>
    tpu.vector_store %arg3[%c0_311, %c0_312, %c0_313, %c0_314], %636 {strides = array<i32>} : memref<1x4x16x16xf32, #tpu.memory_space<vmem>>, vector<1x4x16x16xf32>,
    return
  }
  func.func @transform_0(%arg0: i32) -> i32 {
    %c0_i32 = arith.constant 0 : i32
    %c0_i32_0 = arith.constant 0 : i32
    return %c0_i32 : i32
  }
  func.func @transform_1(%arg0: i32) -> (i32, i32, i32, i32) {
    %c0_i32 = arith.constant 0 : i32
    %c0_i32_0 = arith.constant 0 : i32
    %c0_i32_1 = arith.constant 0 : i32
    %c0_i32_2 = arith.constant 0 : i32
    return %arg0, %c0_i32, %c0_i32_0, %c0_i32_1 : i32, i32, i32, i32
  }
  func.func @transform_2(%arg0: i32) -> (i32, i32, i32, i32) {
    %c0_i32 = arith.constant 0 : i32
    %c0_i32_0 = arith.constant 0 : i32
    %c0_i32_1 = arith.constant 0 : i32
    %c0_i32_2 = arith.constant 0 : i32
    return %arg0, %c0_i32, %c0_i32_0, %c0_i32_1 : i32, i32, i32, i32
  }
}

</mosaic_0001>

<bundles_post_ra>
// kernel: tpu_custom_call.1
= control target key start
LH: loop header
LB: loop body
LE: loop exit
PB: predicated region body
PF: predicated region fallthrough
CT: control target
= control target key end

     0   :  { %7 = vsyncpa [#allocation6], 0  ;;  %s2825_s0 = inlined_call_operand.hbm [shape: f32[99], index: 0, kind: input, shape index: {}]   ;;  %s2826_s1 = inlined_call_operand.hbm [shape: f32[2,4,16,16], index: 1, kind: input, shape index: {}]   ;;  %s2827_s2 = inlined_call_operand.hbm [shape: f32[2,4,16,16], index: 2, kind: output, shape index: {}]  }
   0x1   :  { %8 = vsyncpa [#allocation4], 0 }
   0x2   :  { %10 = vsyncpa [#allocation4 + $0x1], 0 }
   0x3   :  { %11 = vsyncpa [#allocation5], 0 }
   0x4   :  { %13 = vsyncpa [#allocation5 + $0x1], 0  ;;  %s1990_s9 = smov 0   ;;  %s1992_s10 = smov 0  }
   0x5   :  { %s1994_s11 = smov 0   ;;  %s1996_s12 = smov 0  }
   0x6 LB: > { %s2011_s13 = sadd.s32 4294967295, %s1958_s12   ;;  %s1644_s14 = sadd.s32 4294967294, %s1958_s12   ;;  %s1958_s12 = sphi %s1996_s12, %s2847_s12   ;;  %s1954_s11 = sphi %s1994_s11, %s2846_s11   ;;  %s1950_s10 = sphi %s1992_s10, %s2845_s10   ;;  %s1946_s9 = sphi %s1990_s9, %s2844_s9  }
   0x7   : > { %s2015_s15 = sadd.s32 1, %s1958_s12   ;;  %s47_s16 = sadd.s32 1, %s1954_s11 }
   0x8   : > { %s44_s17 = ssub.s32 %s1958_s12, %s2015_s15  ;;  %p54_p0 = scmp.ne.s32.totalorder %s1954_s11, %s1950_s10 }
   0x9   : > { %p45_p1 = scmp.eq.s32.totalorder %s44_s17, 0  ;;  %p55_p2 = scmp.eq.s32.totalorder %s1958_s12, 0 }
   0xa   : > { %p60_p3 = scmp.ne.s32.totalorder %s1950_s10, %s1946_s9  ;;  %p2828_p4 = scmp.eq.s32.totalorder %s2011_s13, 0 }
   0xb   : > { %s2027_s18 = scalar_select %p45_p1, %s1954_s11, %s47_s16  }
   0xc   : > { %p2029_p5 = por %p55_p2, %p54_p0  ;;  %p2035_p6 = por %p2828_p4, %p60_p3 }
   0xd   : > { %p84_p7 = scmp.eq.s32.totalorder %s2011_s13, 1  ;;  %p90_p8 = scmp.eq.s32.totalorder %s1644_s14, 1 }
   0xe   : > { %s2832_s20 = scalar_select %p2035_p6, 1, 0 }
   0xf   : > { %p1645_p9 = scmp.ge.s32.totalorder %s1958_s12, 1  ;;  %p97_p10 = scmp.lt.s32.totalorder %s1958_s12, 3 }
  0x10   : > { %p2042_p11 = por %p84_p7, %p54_p0  ;;  %p2046_p12 = por %p90_p8, %p60_p3 }
  0x11   : > { %p2050_p13 = pnand %p1645_p9, %p97_p10  ;;  %p1781_p4 = scmp.lt.s32.totalorder %s1958_s12, 2 }
  0x12   : > { %s2833_s21 = scalar_select %p2042_p11, 1, 0 }
  0x13   : > { %s2834_s22 = scalar_select %p2046_p12, 1, 0 }
  0x14   : > { %p1768_p2 = pneg %p2050_p13  ;;  %s119_s24 = sand.u32 1, %s1954_s11  }
  0x15   : > { %s1758_s25 = sshll.u32 %s1958_s12, 10  ;;  %p2836_p6 = scmp.eq.s32.totalorder %s2011_s13, 0 }
  0x16   : > { %p2064_p7 = pnand %p1781_p4, %p2029_p5  ;;  %s1648_s27 = sshll.u32 %s119_s24, 6 }
  0x17   : > { %p1769_p0 = pnand %p1768_p2, %p2836_p6  ;;  %s1845_s30 = scalar_lea.hbm %s2825_s0, 16 }
  0x18   : > { %p1846_p3 = scmp.ne.s32.totalorder %s2825_s0, %s1845_s30  ;;  %p1852_p6 = scmp.lt.u32.totalorder %s1845_s30, %s2825_s0 }
  0x19   : > { %p1847_p8 = pneg %p1769_p0 }
  0x1b   : > { %p1848_p9 = pnand %p1847_p8, %p1846_p3 }
  0x1d   : > { %p1849_p10 = pneg %p1848_p9 }
  0x1f   : > { %p1854_p4 = pnand %p1852_p6, %p1849_p10 }
  0x21   : > { %1857 = shalt.err (!%p1854_p4)
}
  0x22   : > { %s1960_s7 = smov [#allocation3]   ;;  %s2083_s19 = scalar_lea.hbm %s2826_s1, %s1758_s25 }
  0x23   : > { %1771 = dma.hbm_to_smem (!%p1769_p0), %s2825_s0, 16, %s1960_s7, [#allocation6]  }
  0x24   : > { %s123_s28 = scalar_lea.vmem [#allocation7], %s1648_s27  ;;  %s2087_s30 = scalar_lea.sflag [#allocation4], %s119_s24 }
  0x25   : > { %s130_s29 = sshll.u32 %s123_s28, 4  ;;  %s1858_s3 = scalar_lea.hbm %s2083_s19, 1024  ;;  %s2085_s29 = int_to_ptr.vmem [resolvable:$true] %s130_s29 }
  0x26   : > { %p1859_p5 = scmp.ne.s32.totalorder %s2083_s19, %s1858_s3  ;;  %p1860_p2 = pneg %p2064_p7 }
  0x27   : > { %s1863_s5 = scalar_lea.hbm %s2826_s1, 2048  ;;  %p1864_p8 = scmp.lt.u32.totalorder %s2083_s19, %s2826_s1 }
  0x28   : > { %p1861_p0 = pnand %p1860_p2, %p1859_p5  ;;  %p1865_p9 = scmp.lt.u32.totalorder %s1863_s5, %s1858_s3 }
  0x29   : > { %p1867_p6 = scmp.lt.u32.totalorder %s1858_s3, %s2083_s19 }
  0x2a   : > { %p1862_p3 = pneg %p1861_p0  ;;  %p1866_p10 = por %p1865_p9, %p1864_p8 }
  0x2c   : > { %p1868_p4 = por %p1867_p6, %p1866_p10 }
  0x2e   : > { %p1869_p1 = pnand %p1868_p4, %p1862_p3 }
  0x30   : > { %1872 = shalt.err (!%p1869_p1)
}
  0x31   : > { %s1873_s24 = scalar_lea.vmem %s2085_s29, 1024  ;;  %s1961_s27 = smov [#allocation7]  }
  0x32   : > { %p1874_p5 = scmp.ne.s32.totalorder %s2085_s29, %s1873_s24  ;;  %s1878_s8 = sshll.u32 %s1961_s27, 4  ;;  %s1879_s8 = int_to_ptr.vmem [resolvable:$false] %s1878_s8 }
  0x33   : > { %s1880_s14 = scalar_lea.vmem %s1879_s8, 2048  ;;  %p1881_p11 = scmp.lt.s32.totalorder %s2085_s29, %s1879_s8 }
  0x34   : > { %p1876_p0 = pnand %p1874_p5, %p1860_p2  ;;  %p1882_p8 = scmp.lt.s32.totalorder %s1880_s14, %s1873_s24 }
  0x36   : > { %p1877_p12 = pneg %p1876_p0  ;;  %p1883_p9 = por %p1882_p8, %p1881_p11 }
  0x38   : > { %p1884_p10 = pnand %p1883_p9, %p1877_p12 }
  0x3a   : > { %1887 = shalt.err (!%p1884_p10)
}
  0x3b   : > { %s1962_s16 = smov 128   ;;  %s1963_s17 = smov 8  }
  0x3c   : > { %1775 = dma.hbm_to_vmem [thread:$0]  (!%p2064_p7), %s2083_s19, 1024, %s2085_s29, %s2087_s30, %s1962_s16, %s1962_s16, %s1963_s17  }
  0x3d   : > { %142 = sbr.rel (%p2050_p13) target bundleno = 708 (0x2c4), region = 28  ;;  %p2838_p1 = scmp.eq.s32.totalorder (!%p2050_p13), %s2011_s13, 0 }
  0x44   : > { %1933 = dma.done.wait (%p2838_p1), [#allocation6], 16   ;;  %p2839_p2 = pmov %p2838_p1 }
  0x45   : > { %s2122_s28 = sand.u32 1, %s1950_s10   ;;  %p2840_p11 = scmp.ne.s32.totalorder %s2832_s20, 0 }
  0x46   : > { %1935 = vsyncadd (%p2839_p2), [#allocation6], 4294967280  ;;  %s1653_s3 = sshll.u32 %s2122_s28, 6  ;;  %s149_s25 = scalar_lea.sflag [#allocation4], %s2122_s28 }
  0x47   : > { %s2128_s26 = scalar_lea.vmem [#allocation7], %s1653_s3 }
  0x48   : > { %1937 = dma.done.wait (%p2840_p11), %s149_s25, 1024  }
  0x49   : > { %1939 = vsyncadd (%p2840_p11), %s149_s25, 4294966272 }
  0x4a   : > { %157 = sfence }
  0x4b   : > { %v174_v0 = vld [vmem:[%s2128_s26] sm:$0xff]  ;;  %v176_v1 = vld [vmem:[%s2128_s26 + $0x10] sm:$0xff]  ;;  %vm196_vm0 = vcmask 179200   ;;  %v175_v4 = vld [vmem:[%s2128_s26 + $0x8] sm:$0xff]  ;;  %v1964_v6 = vmov 0.0   ;;  %vm199_vm1 = vcmask 177152  }
  0x4c   : > { %v178_v2 = vld [vmem:[%s2128_s26 + $0x20] sm:$0xff]  ;;  %v182_v3 = vadd.f32 %v176_v1, %v174_v0  ;;  %v177_v5 = vld [vmem:[%s2128_s26 + $0x18] sm:$0xff]  ;;  %197 = vst.msk [vmem:[#allocation2] sm:$0xff] %vm196_vm0, %v1964_v6  ;;  %198 = vst.msk [vmem:[#allocation2 + $0x8] sm:$0xff] %vm196_vm0, %v1964_v6  ;;  %v184_v7 = vmax.f32 %v174_v0, %v176_v1  ;;  %s1965_s20 = smov 3   ;;  %vm212_vm2 = vcmask 154648  }
  0x4d   : > { %201 = vst.msk [vmem:[#allocation2 + $0x18] sm:$0xff] %vm196_vm0, %v1964_v6  ;;  %202 = vst.msk [vmem:[#allocation2 + $0x20] sm:$0xff] %vm196_vm0, %v1964_v6  ;;  %v180_v8 = vld [vmem:[%s2128_s26 + $0x30] sm:$0xff]  ;;  %v179_v9 = vld [vmem:[%s2128_s26 + $0x28] sm:$0xff]  ;;  %v183_v10 = vadd.f32 %v177_v5, %v175_v4  ;;  %v185_v11 = vmax.f32 %v175_v4, %v177_v5  ;;  %s1656_s23 = sld [smem:[#allocation3 + $0x1]]  ;;  %s1657_s19 = sld [smem:[#allocation3 + $0x2]] }
  0x4e   : > { %v186_v12 = vadd.f32 %v182_v3, %v178_v2  ;;  %v181_v13 = vld [vmem:[%s2128_s26 + $0x38] sm:$0xff]  ;;  %v188_v14 = vmax.f32 %v184_v7, %v178_v2  ;;  %200 = vst.msk [vmem:[#allocation2 + $0x10] sm:$0x3f] %vm199_vm1, %v1964_v6  ;;  %203 = vst.msk [vmem:[#allocation2 + $0x28] sm:$0x3f] %vm199_vm1, %v1964_v6  ;;  %s1658_s29 = sld [smem:[#allocation3 + $0x3]] }
  0x4f   : > { %v187_v15 = vadd.f32 %v183_v10, %v179_v9  ;;  %v189_v16 = vmax.f32 %v185_v11, %v179_v9  ;;  %s1659_s30 = sld [smem:[#allocation3 + $0x4]]  ;;  %s1966_s4 = smov 127   ;;  %vm1536_vm3 = vcmask 130048  }
  0x50   : > { %v190_v17 = vadd.f32 %v186_v12, %v180_v8  ;;  %v192_v18 = vmax.f32 %v188_v14, %v180_v8  ;;  %s1660_s5 = sld [smem:[#allocation3 + $0x5]]  ;;  %s1967_s6 = smov 126  }
  0x51   : > { %v191_v19 = vadd.f32 %v187_v15, %v181_v13  ;;  %v193_v21 = vmax.f32 %v189_v16, %v181_v13  ;;  %s1661_s7 = sld [smem:[#allocation3 + $0x6]]  ;;  %s1968_s24 = smov 125  }
  0x52   : > { %v194_v20 = vmul.f32 0.25, %v190_v17  ;;  %217 = vrot.lane.b32.xlu1 %v192_v18, %s1965_s20  ;;  %s1663_s27 = sld [smem:[#allocation3 + $0x8]]  ;;  %s1969_s8 = smov 124  }
  0x53   : > { %v195_v22 = vmul.f32 0.25, %v191_v19  ;;  %v237_v27 = vstv %s1656_s23  ;;  %v251_v30 = vstv %s1657_s19  ;;  %s1664_s14 = sld [smem:[#allocation3 + $0x9]]  ;;  %s1970_s16 = smov 123  }
  0x54   : > { %206 = vrot.lane.b32.xlu0 %v194_v20, %s1965_s20  ;;  %v265_v34 = vstv %s1658_s29  ;;  %s1665_s17 = sld [smem:[#allocation3 + $0xa]]  ;;  %s1971_s25 = smov 122  }
  0x55   : > { %v279_v37 = vstv %s1659_s30  ;;  %s1667_s23 = sld [smem:[#allocation3 + $0xc]]  ;;  %s1668_s19 = sld [smem:[#allocation3 + $0xd]] }
  0x56   : > { %219 = vrot.lane.b32.xlu1 %v193_v21, %s1965_s20  ;;  %v293_v40 = vstv %s1660_s5  ;;  %s1670_s29 = sld [smem:[#allocation3 + $0xf]]  ;;  %s1671_s30 = sld [smem:[#allocation3 + $0x10]] }
  0x57   : > { %v307_v43 = vstv %s1661_s7  ;;  %s1672_s5 = sld [smem:[#allocation3 + $0x11]]  ;;  %s1673_s7 = sld [smem:[#allocation3 + $0x12]] }
  0x58   : > { %208 = vrot.lane.b32.xlu0 %v195_v22, %s1965_s20  ;;  %v329_v47 = vstv %s1663_s27  ;;  %s1666_s20 = sld [smem:[#allocation3 + $0xb]]  ;;  %p2841_p13 = scmp.ne.s32.totalorder %s2833_s21, 0 }
  0x59   : > { %v343_v50 = vstv %s1664_s14  ;;  %s1674_s27 = sld [smem:[#allocation3 + $0x13]]  ;;  %s1675_s14 = sld [smem:[#allocation3 + $0x14]] }
  0x5a   : > { %v357_v54 = vstv %s1665_s17  ;;  %s1677_s17 = sld [smem:[#allocation3 + $0x16]] }
  0x5b   : > { %v385_v60 = vstv %s1667_s23  ;;  %v399_v63 = vstv %s1668_s19  ;;  %s1679_s23 = sld [smem:[#allocation3 + $0x18]]  ;;  %s1680_s19 = sld [smem:[#allocation3 + $0x19]] }
  0x5c   : > { %v421_v3 = vstv %s1670_s29  ;;  %v435_v6 = vstv %s1671_s30  ;;  %s1681_s29 = sld [smem:[#allocation3 + $0x1a]]  ;;  %s1682_s30 = sld [smem:[#allocation3 + $0x1b]] }
  0x5d   : > { %v449_v10 = vstv %s1672_s5  ;;  %v463_v13 = vstv %s1673_s7  ;;  %s1684_s5 = sld [smem:[#allocation3 + $0x1d]]  ;;  %s1685_s7 = sld [smem:[#allocation3 + $0x1e]] }
  0x5e   : > { %v371_v57 = vstv %s1666_s20  ;;  %s1678_s20 = sld [smem:[#allocation3 + $0x17]] }
  0x5f   : > { %v477_v16 = vstv %s1674_s27  ;;  %v491_v19 = vstv %s1675_s14  ;;  %s1686_s27 = sld [smem:[#allocation3 + $0x1f]]  ;;  %s1687_s14 = sld [smem:[#allocation3 + $0x20]] }
  0xc4   : > { %v218_v23 = vpop.permute.xlu1 %217 }
  0xc5   : > { %224 = vst.msk [vmem:[#allocation2 + $0x1b] sm:$0xff] %vm212_vm2, %v218_v23  ;;  %v513_v23 = vstv %s1677_s17  ;;  %s1688_s17 = sld [smem:[#allocation3 + $0x21]] }
  0xc6   : > { %v207_v24 = vpop.permute.xlu0 %206 }
  0xc7   : > { %213 = vst.msk [vmem:[#allocation2 + $0x3] sm:$0xff] %vm212_vm2, %v207_v24 }
  0xc8   : > { %v220_v25 = vpop.permute.xlu1 %219 }
  0xc9   : > { %225 = vst.msk [vmem:[#allocation2 + $0x23] sm:$0xff] %vm212_vm2, %v220_v25 }
  0xca   : > { %v209_v26 = vpop.permute.xlu0 %208 }
  0xcb   : > { %214 = vst.msk [vmem:[#allocation2 + $0xb] sm:$0xff] %vm212_vm2, %v209_v26  ;;  %v527_v26 = vstv %s1678_s20  ;;  %s1689_s20 = sld [smem:[#allocation3 + $0x22]] }
  0xce   : > { %v2142_v28 = vld [vmem:[#allocation2] sm:$0xff] }
  0xcf   : > { %v238_v29 = vmul.f32 %v237_v27, %v2142_v28  ;;  %v252_v32 = vmul.f32 %v251_v30, %v2142_v28  ;;  %v266_v35 = vmul.f32 %v265_v34, %v2142_v28  ;;  %v280_v38 = vmul.f32 %v279_v37, %v2142_v28  ;;  %v2165_v45 = vld [vmem:[#allocation2 + $0x1] sm:$0xff] }
  0xd0   : > { %v294_v41 = vmul.f32 %v293_v40, %v2142_v28  ;;  %v308_v44 = vmul.f32 %v307_v43, %v2142_v28  ;;  %v330_v48 = vmul.f32 %v329_v47, %v2165_v45  ;;  %v344_v52 = vmul.f32 %v343_v50, %v2165_v45  ;;  %v2193_v1 = vld [vmem:[#allocation2 + $0x2] sm:$0xff] }
  0xd1   : > { %242 = vrot.lane.b32.xlu0 %v238_v29, %s1966_s4  ;;  %v358_v55 = vmul.f32 %v357_v54, %v2165_v45  ;;  %v372_v58 = vmul.f32 %v371_v57, %v2165_v45  ;;  %v386_v61 = vmul.f32 %v385_v60, %v2165_v45  ;;  %v400_v0 = vmul.f32 %v399_v63, %v2165_v45  ;;  %v2221_v21 = vld [vmem:[#allocation2 + $0x3] sm:$0xff] }
  0xd2   : > { %v2146_v31 = vld [vmem:[#allocation2 + $0x8] sm:$0xff]  ;;  %v422_v4 = vmul.f32 %v421_v3, %v2193_v1  ;;  %v436_v8 = vmul.f32 %v435_v6, %v2193_v1  ;;  %v450_v11 = vmul.f32 %v449_v10, %v2193_v1  ;;  %v464_v14 = vmul.f32 %v463_v13, %v2193_v1 }
  0xd3   : > { %v239_v33 = vmul.f32 %v237_v27, %v2146_v31  ;;  %v253_v36 = vmul.f32 %v251_v30, %v2146_v31  ;;  %v267_v39 = vmul.f32 %v265_v34, %v2146_v31  ;;  %v281_v42 = vmul.f32 %v279_v37, %v2146_v31  ;;  %v2172_v51 = vld [vmem:[#allocation2 + $0x9] sm:$0xff] }
  0xd4   : > { %v295_v46 = vmul.f32 %v293_v40, %v2146_v31  ;;  %v309_v49 = vmul.f32 %v307_v43, %v2146_v31  ;;  %v331_v53 = vmul.f32 %v329_v47, %v2172_v51  ;;  %v345_v56 = vmul.f32 %v343_v50, %v2172_v51  ;;  %v2200_v7 = vld [vmem:[#allocation2 + $0xa] sm:$0xff] }
  0xd5   : > { %256 = vrot.lane.b32.xlu0 %v252_v32, %s1967_s6  ;;  %244 = vrot.lane.b32.xlu1 %v239_v33, %s1966_s4  ;;  %v359_v59 = vmul.f32 %v357_v54, %v2172_v51  ;;  %v373_v62 = vmul.f32 %v371_v57, %v2172_v51  ;;  %v387_v2 = vmul.f32 %v385_v60, %v2172_v51  ;;  %v2228_v27 = vld [vmem:[#allocation2 + $0xb] sm:$0xff]  ;;  %v541_v32 = vstv %s1679_s23  ;;  %s2270_s23 = sld [smem:[#allocation3 + $0x24]] }
  0xd6   : > { %v401_v5 = vmul.f32 %v399_v63, %v2172_v51  ;;  %v423_v9 = vmul.f32 %v421_v3, %v2200_v7  ;;  %v437_v12 = vmul.f32 %v435_v6, %v2200_v7  ;;  %v451_v15 = vmul.f32 %v449_v10, %v2200_v7  ;;  %v2249_v43 = vld [vmem:[#allocation2 + $0x4] sm:$0xff]  ;;  %v2256_v50 = vld [vmem:[#allocation2 + $0xc] sm:$0xff] }
  0xd7   : > { %v478_v17 = vmul.f32 %v477_v16, %v2193_v1  ;;  %v465_v18 = vmul.f32 %v463_v13, %v2200_v7  ;;  %v492_v20 = vmul.f32 %v491_v19, %v2193_v1  ;;  %v479_v22 = vmul.f32 %v477_v16, %v2200_v7  ;;  %v2285_v3 = vld [vmem:[#allocation2 + $0x5] sm:$0xff] }
  0xd8   : > { %v514_v24 = vmul.f32 %v513_v23, %v2221_v21  ;;  %v493_v25 = vmul.f32 %v491_v19, %v2200_v7  ;;  %v528_v29 = vmul.f32 %v527_v26, %v2221_v21  ;;  %v515_v30 = vmul.f32 %v513_v23, %v2228_v27 }
  0xd9   : > { %270 = vrot.lane.b32.xlu0 %v266_v35, %s1968_s24  ;;  %258 = vrot.lane.b32.xlu1 %v253_v36, %s1967_s6  ;;  %v542_v33 = vmul.f32 %v541_v32, %v2221_v21  ;;  %v529_v34 = vmul.f32 %v527_v26, %v2228_v27  ;;  %v555_v35 = vstv %s1680_s19  ;;  %v543_v37 = vmul.f32 %v541_v32, %v2228_v27  ;;  %s2272_s19 = sld [smem:[#allocation3]] }
  0xda   : > { %v556_v36 = vmul.f32 %v555_v35, %v2221_v21  ;;  %v557_v40 = vmul.f32 %v555_v35, %v2228_v27  ;;  %v633_v54 = vstv %s1686_s27  ;;  %v647_v57 = vstv %s1687_s14  ;;  %s2308_s27 = sld [smem:[#allocation3 + $0x28]]  ;;  %s2310_s14 = sld [smem:[#allocation3 + $0x7]] }
  0xdb   : > { %v661_v60 = vstv %s1688_s17  ;;  %v675_v63 = vstv %s1689_s20  ;;  %s2318_s17 = sld [smem:[#allocation3 + $0x29]]  ;;  %s2325_s20 = sld [smem:[#allocation3 + $0x2b]] }
  0xdd   : > { %284 = vrot.lane.b32.xlu0 %v280_v38, %s1969_s8  ;;  %272 = vrot.lane.b32.xlu1 %v267_v39, %s1968_s24  ;;  %v569_v38 = vstv %s1681_s29  ;;  %s2278_s29 = sld [smem:[#allocation3 + $0x25]] }
  0xde   : > { %v570_v39 = vmul.f32 %v569_v38, %v2221_v21 }
  0xdf   : > { %v231_v6 = vstv %s2272_s19  ;;  %s2343_s19 = sld [smem:[#allocation3 + $0x2d]] }
  0xe0   : > { %v232_v10 = vmul.f32 %v231_v6, %v2142_v28 }
  0xe1   : > { %298 = vrot.lane.b32.xlu0 %v294_v41, %s1970_s16  ;;  %286 = vrot.lane.b32.xlu1 %v281_v42, %s1969_s8  ;;  %v583_v41 = vstv %s1682_s30  ;;  %s2280_s30 = sld [smem:[#allocation3 + $0x62]] }
  0xe2   : > { %v584_v42 = vmul.f32 %v583_v41, %v2221_v21 }
  0xe3   : > { %v711_v13 = vstv %s2278_s29  ;;  %s2351_s29 = sld [smem:[#allocation3 + $0x2e]] }
  0xe5   : > { %312 = vrot.lane.b32.xlu0 %v308_v44, %s1971_s25  ;;  %300 = vrot.lane.b32.xlu1 %v295_v46, %s1970_s16  ;;  %v571_v44 = vmul.f32 %v569_v38, %v2228_v27  ;;  %v605_v46 = vstv %s1684_s5  ;;  %s2289_s5 = sld [smem:[#allocation3 + $0x26]] }
  0xe6   : > { %v606_v47 = vmul.f32 %v605_v46, %v2249_v43 }
  0xe9   : > { %334 = vrot.lane.b32.xlu0 %v330_v48, %s1966_s4  ;;  %314 = vrot.lane.b32.xlu1 %v309_v49, %s1971_s25  ;;  %v585_v48 = vmul.f32 %v583_v41, %v2228_v27  ;;  %v619_v49 = vstv %s1685_s7  ;;  %s2298_s7 = sld [smem:[#allocation3 + $0x27]]  ;;  %v323_v41 = vstv %s2310_s14  ;;  %s2385_s14 = sld [smem:[#allocation3 + $0x33]] }
  0xed   : > { %348 = vrot.lane.b32.xlu0 %v344_v52, %s1967_s6  ;;  %336 = vrot.lane.b32.xlu1 %v331_v53, %s1966_s4  ;;  %v620_v52 = vmul.f32 %v619_v49, %v2249_v43  ;;  %v607_v53 = vmul.f32 %v605_v46, %v2256_v50 }
  0xef   : > { %v739_v32 = vstv %s2298_s7  ;;  %s2369_s7 = sld [smem:[#allocation3 + $0x30]] }
  0xf1   : > { %362 = vrot.lane.b32.xlu0 %v358_v55, %s1968_s24  ;;  %350 = vrot.lane.b32.xlu1 %v345_v56, %s1967_s6  ;;  %v634_v55 = vmul.f32 %v633_v54, %v2249_v43  ;;  %v621_v56 = vmul.f32 %v619_v49, %v2256_v50  ;;  %v324_v49 = vmul.f32 %v323_v41, %v2165_v45  ;;  %v2339_v45 = vld [vmem:[#allocation2 + $0x6] sm:$0xff] }
  0xf5   : > { %376 = vrot.lane.b32.xlu0 %v372_v58, %s1969_s8  ;;  %364 = vrot.lane.b32.xlu1 %v359_v59, %s1968_s24  ;;  %v648_v58 = vmul.f32 %v647_v57, %v2249_v43  ;;  %v635_v59 = vmul.f32 %v633_v54, %v2256_v50 }
  0xf9   : > { %390 = vrot.lane.b32.xlu0 %v386_v61, %s1970_s16  ;;  %378 = vrot.lane.b32.xlu1 %v373_v62, %s1969_s8  ;;  %v662_v61 = vmul.f32 %v661_v60, %v2249_v43  ;;  %v649_v62 = vmul.f32 %v647_v57, %v2256_v50 }
  0xfd   : > { %404 = vrot.lane.b32.xlu0 %v400_v0, %s1971_s25  ;;  %392 = vrot.lane.b32.xlu1 %v387_v2, %s1970_s16  ;;  %v676_v2 = vmul.f32 %v675_v63, %v2249_v43 }
 0x101   : > { %426 = vrot.lane.b32.xlu0 %v422_v4, %s1966_s4  ;;  %406 = vrot.lane.b32.xlu1 %v401_v5, %s1971_s25  ;;  %v663_v4 = vmul.f32 %v661_v60, %v2256_v50  ;;  %v697_v5 = vstv %s2270_s23  ;;  %s2334_s23 = sld [smem:[#allocation3 + $0x2c]] }
 0x105   : > { %440 = vrot.lane.b32.xlu0 %v436_v8, %s1967_s6  ;;  %428 = vrot.lane.b32.xlu1 %v423_v9, %s1966_s4  ;;  %v698_v9 = vmul.f32 %v697_v5, %v2285_v3 }
 0x109   : > { %454 = vrot.lane.b32.xlu0 %v450_v11, %s1968_s24  ;;  %442 = vrot.lane.b32.xlu1 %v437_v12, %s1967_s6  ;;  %v677_v12 = vmul.f32 %v675_v63, %v2256_v50  ;;  %v789_v63 = vstv %s2325_s20  ;;  %s2402_s20 = sld [smem:[#allocation3 + $0x35]] }
 0x10d   : > { %468 = vrot.lane.b32.xlu0 %v464_v14, %s1969_s8  ;;  %456 = vrot.lane.b32.xlu1 %v451_v15, %s1968_s24  ;;  %v227_v14 = vstv %s2280_s30  ;;  %v2301_v15 = vld [vmem:[#allocation2 + $0xd] sm:$0xff]  ;;  %s2360_s30 = sld [smem:[#allocation3 + $0x2f]] }
 0x10e   : > { %v699_v28 = vmul.f32 %v697_v5, %v2301_v15  ;;  %v741_v54 = vmul.f32 %v739_v32, %v2301_v15 }
 0x111   : > { %482 = vrot.lane.b32.xlu0 %v478_v17, %s1970_s16  ;;  %470 = vrot.lane.b32.xlu1 %v465_v18, %s1969_s8  ;;  %v712_v17 = vmul.f32 %v711_v13, %v2285_v3  ;;  %v234_v18 = vadd.f32 %v232_v10, %v227_v14  ;;  %v803_v10 = vstv %s2334_s23  ;;  %s2411_s23 = sld [smem:[#allocation3 + $0x36]] }
 0x115   : > { %496 = vrot.lane.b32.xlu0 %v492_v20, %s1971_s25  ;;  %484 = vrot.lane.b32.xlu1 %v479_v22, %s1970_s16  ;;  %v725_v20 = vstv %s2289_s5  ;;  %v233_v22 = vmul.f32 %v231_v6, %v2146_v31  ;;  %v790_v6 = vmul.f32 %v789_v63, %v2339_v45  ;;  %s2362_s5 = sld [smem:[#allocation3 + $0xe]] }
 0x119   : > { %518 = vrot.lane.b32.xlu0 %v514_v24, %s1966_s4  ;;  %498 = vrot.lane.b32.xlu1 %v493_v25, %s1971_s25  ;;  %v726_v25 = vmul.f32 %v725_v20, %v2285_v3 }
 0x11d   : > { %532 = vrot.lane.b32.xlu0 %v528_v29, %s1967_s6  ;;  %520 = vrot.lane.b32.xlu1 %v515_v30, %s1966_s4  ;;  %v713_v30 = vmul.f32 %v711_v13, %v2301_v15 }
 0x121   : > { %546 = vrot.lane.b32.xlu0 %v542_v33, %s1968_s24  ;;  %534 = vrot.lane.b32.xlu1 %v529_v34, %s1967_s6  ;;  %v235_v33 = vadd.f32 %v233_v22, %v227_v14 }
 0x125   : > { %560 = vrot.lane.b32.xlu0 %v556_v36, %s1969_s8  ;;  %548 = vrot.lane.b32.xlu1 %v543_v37, %s1968_s24  ;;  %v740_v36 = vmul.f32 %v739_v32, %v2285_v3 }
 0x129   : > { %574 = vrot.lane.b32.xlu0 %v570_v39, %s1970_s16  ;;  %562 = vrot.lane.b32.xlu1 %v557_v40, %s1969_s8  ;;  %v727_v39 = vmul.f32 %v725_v20, %v2301_v15  ;;  %v753_v40 = vstv %s2308_s27  ;;  %s2376_s27 = sld [smem:[#allocation3 + $0x32]] }
 0x12d   : > { %588 = vrot.lane.b32.xlu0 %v584_v42, %s1971_s25  ;;  %576 = vrot.lane.b32.xlu1 %v571_v44, %s1970_s16 }
 0x131   : > { %610 = vrot.lane.b32.xlu0 %v606_v47, %s1966_s4  ;;  %590 = vrot.lane.b32.xlu1 %v585_v48, %s1971_s25  ;;  %v754_v48 = vmul.f32 %v753_v40, %v2285_v3 }
 0x135   : > { %624 = vrot.lane.b32.xlu0 %v620_v52, %s1967_s6  ;;  %612 = vrot.lane.b32.xlu1 %v607_v53, %s1966_s4 }
 0x139   : > { %638 = vrot.lane.b32.xlu0 %v634_v55, %s1968_s24  ;;  %626 = vrot.lane.b32.xlu1 %v621_v56, %s1967_s6  ;;  %v767_v55 = vstv %s2318_s17  ;;  %s2394_s17 = sld [smem:[#allocation3 + $0x34]] }
 0x13a   : > { %v768_v60 = vmul.f32 %v767_v55, %v2285_v3 }
 0x13d   : > { %652 = vrot.lane.b32.xlu0 %v648_v58, %s1969_s8  ;;  %640 = vrot.lane.b32.xlu1 %v635_v59, %s1968_s24 }
 0x141   : > { %666 = vrot.lane.b32.xlu0 %v662_v61, %s1970_s16  ;;  %654 = vrot.lane.b32.xlu1 %v649_v62, %s1969_s8  ;;  %v755_v62 = vmul.f32 %v753_v40, %v2301_v15 }
 0x143   : > { %v243_v0 = vpop.permute.xlu0 %242 }
 0x144   : > { %v248_v23 = vadd.f32 %v243_v0, %v234_v18  ;;  %v325_v0 = vmul.f32 %v323_v41, %v2172_v51 }
 0x145   : > { %680 = vrot.lane.b32.xlu0 %v676_v2, %s1971_s25  ;;  %668 = vrot.lane.b32.xlu1 %v663_v4, %s1970_s16 }
 0x147   : > { %v257_v8 = vpop.permute.xlu0 %256  ;;  %v245_v11 = vpop.permute.xlu1 %244 }
 0x148   : > { %v262_v26 = vadd.f32 %v257_v8, %v248_v23  ;;  %v249_v34 = vadd.f32 %v245_v11, %v235_v33  ;;  %v2353_v11 = vld [vmem:[#allocation2 + $0xe] sm:$0xff]  ;;  %v831_v23 = vstv %s2351_s29  ;;  %s2420_s29 = sld [smem:[#allocation3 + $0x37]] }
 0x149   : > { %702 = vrot.lane.b32.xlu0 %v698_v9, %s1966_s4  ;;  %682 = vrot.lane.b32.xlu1 %v677_v12, %s1971_s25  ;;  %v769_v9 = vmul.f32 %v767_v55, %v2301_v15  ;;  %v804_v12 = vmul.f32 %v803_v10, %v2339_v45  ;;  %v791_v14 = vmul.f32 %v789_v63, %v2353_v11  ;;  %v2391_v55 = vld [vmem:[#allocation2 + $0x18] sm:$0xff] }
 0x14a   : > { %v805_v22 = vmul.f32 %v803_v10, %v2353_v11 }
 0x14b   : > { %v271_v16 = vpop.permute.xlu0 %270  ;;  %v259_v19 = vpop.permute.xlu1 %258 }
 0x14c   : > { %v276_v31 = vadd.f32 %v271_v16, %v262_v26  ;;  %v263_v42 = vadd.f32 %v259_v19, %v249_v34  ;;  %v817_v16 = vstv %s2343_s19  ;;  %v415_v34 = vstv %s2362_s5  ;;  %s2413_s19 = sld [smem:[#allocation3 + $0x15]]  ;;  %s2436_s5 = sld [smem:[#allocation3 + $0x3a]] }
 0x14d   : > { %716 = vrot.lane.b32.xlu0 %v712_v17, %s1967_s6  ;;  %704 = vrot.lane.b32.xlu1 %v699_v28, %s1966_s4  ;;  %v818_v19 = vmul.f32 %v817_v16, %v2339_v45  ;;  %v819_v33 = vmul.f32 %v817_v16, %v2353_v11  ;;  %v416_v40 = vmul.f32 %v415_v34, %v2193_v1  ;;  %v923_v16 = vstv %s2402_s20  ;;  %s2471_s20 = sld [smem:[#allocation3 + $0x3e]] }
 0x14f   : > { %v285_v24 = vpop.permute.xlu0 %284  ;;  %v273_v29 = vpop.permute.xlu1 %272 }
 0x150   : > { %v290_v37 = vadd.f32 %v285_v24, %v276_v31  ;;  %v277_v46 = vadd.f32 %v273_v29, %v263_v42  ;;  %v832_v29 = vmul.f32 %v831_v23, %v2339_v45  ;;  %v845_v31 = vstv %s2360_s30  ;;  %s2427_s30 = sld [smem:[#allocation3 + $0x39]] }
 0x151   : > { %730 = vrot.lane.b32.xlu0 %v726_v25, %s1968_s24  ;;  %718 = vrot.lane.b32.xlu1 %v713_v30, %s1967_s6 }
 0x153   : > { %v299_v35 = vpop.permute.xlu0 %298  ;;  %v287_v38 = vpop.permute.xlu1 %286 }
 0x154   : > { %v304_v44 = vadd.f32 %v299_v35, %v290_v37  ;;  %v291_v56 = vadd.f32 %v287_v38, %v277_v46  ;;  %v859_v46 = vstv %s2369_s7  ;;  %s2445_s7 = sld [smem:[#allocation3 + $0x3b]] }
 0x155   : > { %744 = vrot.lane.b32.xlu0 %v740_v36, %s1969_s8  ;;  %732 = vrot.lane.b32.xlu1 %v727_v39, %s1968_s24  ;;  %v846_v39 = vmul.f32 %v845_v31, %v2339_v45  ;;  %v861_v63 = vmul.f32 %v859_v46, %v2353_v11 }
 0x157   : > { %v313_v47 = vpop.permute.xlu0 %312  ;;  %v301_v52 = vpop.permute.xlu1 %300 }
 0x158   : > { %v318_v53 = vadd.f32 %v313_v47, %v304_v44  ;;  %v305_v58 = vadd.f32 %v301_v52, %v291_v56  ;;  %v833_v44 = vmul.f32 %v831_v23, %v2353_v11  ;;  %v881_v56 = vstv %s2376_s27  ;;  %s2453_s27 = sld [smem:[#allocation3 + $0x3c]] }
 0x159   : > { %758 = vrot.lane.b32.xlu0 %v754_v48, %s1970_s16  ;;  %746 = vrot.lane.b32.xlu1 %v741_v54, %s1969_s8  ;;  %v847_v54 = vmul.f32 %v845_v31, %v2353_v11 }
 0x15a   : > { %v326_v57 = vadd.f32 %v324_v49, %v318_v53  ;;  %v860_v53 = vmul.f32 %v859_v46, %v2339_v45  ;;  %v2442_v46 = vld [vmem:[#allocation2 + $0x19] sm:$0xff] }
 0x15b   : > { %v335_v59 = vpop.permute.xlu0 %334  ;;  %v315_v61 = vpop.permute.xlu1 %314 }
 0x15c   : > { %v319_v2 = vadd.f32 %v315_v61, %v305_v58  ;;  %v340_v17 = vadd.f32 %v335_v59, %v326_v57  ;;  %v417_v57 = vmul.f32 %v415_v34, %v2200_v7  ;;  %v882_v61 = vmul.f32 %v881_v56, %v2391_v55 }
 0x15d   : > { %772 = vrot.lane.b32.xlu0 %v768_v60, %s1971_s25  ;;  %760 = vrot.lane.b32.xlu1 %v755_v62, %s1970_s16 }
 0x15e   : > { %v327_v4 = vadd.f32 %v325_v0, %v319_v2  ;;  %v895_v0 = vstv %s2385_s14  ;;  %v2405_v2 = vld [vmem:[#allocation2 + $0x20] sm:$0xff]  ;;  %s2462_s14 = sld [smem:[#allocation3 + $0x3d]] }
 0x15f   : > { %v349_v5 = vpop.permute.xlu0 %348  ;;  %v337_v8 = vpop.permute.xlu1 %336 }
 0x160   : > { %v354_v28 = vadd.f32 %v349_v5, %v340_v17  ;;  %v341_v25 = vadd.f32 %v337_v8, %v327_v4  ;;  %v896_v4 = vmul.f32 %v895_v0, %v2391_v55  ;;  %v909_v8 = vstv %s2394_s17  ;;  %s2464_s17 = sld [smem:[#allocation3 + $0x1c]] }
 0x161   : > { %794 = vrot.lane.b32.xlu0 %v790_v6, %s1966_s4  ;;  %774 = vrot.lane.b32.xlu1 %v769_v9, %s1971_s25  ;;  %v883_v6 = vmul.f32 %v881_v56, %v2405_v2  ;;  %v911_v23 = vmul.f32 %v909_v8, %v2405_v2 }
 0x163   : > { %v363_v51 = vpop.permute.xlu0 %362  ;;  %v351_v13 = vpop.permute.xlu1 %350 }
 0x164   : > { %v368_v24 = vadd.f32 %v363_v51, %v354_v28  ;;  %v355_v35 = vadd.f32 %v351_v13, %v341_v25  ;;  %v910_v51 = vmul.f32 %v909_v8, %v2391_v55  ;;  %v924_v28 = vmul.f32 %v923_v16, %v2391_v55 }
 0x165   : > { %808 = vrot.lane.b32.xlu0 %v804_v12, %s1967_s6  ;;  %796 = vrot.lane.b32.xlu1 %v791_v14, %s1966_s4  ;;  %v897_v14 = vmul.f32 %v895_v0, %v2405_v2  ;;  %v507_v25 = vstv %s2413_s19  ;;  %v1015_v8 = vstv %s2453_s27  ;;  %s2487_s19 = sld [smem:[#allocation3 + $0x41]]  ;;  %s2522_s27 = sld [smem:[#allocation3 + $0x45]] }
 0x166   : > { %v508_v31 = vmul.f32 %v507_v25, %v2221_v21 }
 0x167   : > { %v377_v18 = vpop.permute.xlu0 %376  ;;  %v365_v20 = vpop.permute.xlu1 %364 }
 0x168   : > { %v382_v30 = vadd.f32 %v377_v18, %v368_v24  ;;  %v369_v37 = vadd.f32 %v365_v20, %v355_v35  ;;  %v937_v24 = vstv %s2411_s23  ;;  %s2478_s23 = sld [smem:[#allocation3 + $0x40]] }
 0x169   : > { %822 = vrot.lane.b32.xlu0 %v818_v19, %s1968_s24  ;;  %810 = vrot.lane.b32.xlu1 %v805_v22, %s1967_s6 }
 0x16b   : > { %v391_v26 = vpop.permute.xlu0 %390  ;;  %v379_v32 = vpop.permute.xlu1 %378 }
 0x16c   : > { %v396_v36 = vadd.f32 %v391_v26, %v382_v30  ;;  %v383_v47 = vadd.f32 %v379_v32, %v369_v37  ;;  %v951_v37 = vstv %s2420_s29  ;;  %s2496_s29 = sld [smem:[#allocation3 + $0x42]] }
 0x16d   : > { %836 = vrot.lane.b32.xlu0 %v832_v29, %s1969_s8  ;;  %824 = vrot.lane.b32.xlu1 %v819_v33, %s1968_s24  ;;  %v938_v33 = vmul.f32 %v937_v24, %v2391_v55  ;;  %v953_v56 = vmul.f32 %v951_v37, %v2405_v2 }
 0x16f   : > { %v405_v38 = vpop.permute.xlu0 %404  ;;  %v393_v41 = vpop.permute.xlu1 %392 }
 0x170   : > { %v410_v42 = vadd.f32 %v405_v38, %v396_v36  ;;  %v397_v49 = vadd.f32 %v393_v41, %v383_v47  ;;  %v925_v36 = vmul.f32 %v923_v16, %v2405_v2  ;;  %v973_v47 = vstv %s2427_s30  ;;  %s2504_s30 = sld [smem:[#allocation3 + $0x43]] }
 0x171   : > { %850 = vrot.lane.b32.xlu0 %v846_v39, %s1970_s16  ;;  %838 = vrot.lane.b32.xlu1 %v833_v44, %s1969_s8  ;;  %v939_v44 = vmul.f32 %v937_v24, %v2405_v2 }
 0x172   : > { %v418_v48 = vadd.f32 %v416_v40, %v410_v42  ;;  %v952_v42 = vmul.f32 %v951_v37, %v2391_v55  ;;  %v2493_v37 = vld [vmem:[#allocation2 + $0x1a] sm:$0xff] }
 0x173   : > { %v427_v52 = vpop.permute.xlu0 %426  ;;  %v407_v1 = vpop.permute.xlu1 %406 }
 0x174   : > { %v411_v58 = vadd.f32 %v407_v1, %v397_v49  ;;  %v432_v9 = vadd.f32 %v427_v52, %v418_v48  ;;  %v509_v48 = vmul.f32 %v507_v25, %v2228_v27  ;;  %v974_v1 = vmul.f32 %v973_v47, %v2442_v46 }
 0x175   : > { %864 = vrot.lane.b32.xlu0 %v860_v53, %s1971_s25  ;;  %852 = vrot.lane.b32.xlu1 %v847_v54, %s1970_s16 }
 0x176   : > { %v419_v59 = vadd.f32 %v417_v57, %v411_v58  ;;  %v987_v57 = vstv %s2436_s5  ;;  %v2456_v58 = vld [vmem:[#allocation2 + $0x21] sm:$0xff]  ;;  %s2513_s5 = sld [smem:[#allocation3 + $0x44]] }
 0x177   : > { %v441_v60 = vpop.permute.xlu0 %440  ;;  %v429_v62 = vpop.permute.xlu1 %428 }
 0x178   : > { %v446_v12 = vadd.f32 %v441_v60, %v432_v9  ;;  %v433_v18 = vadd.f32 %v429_v62, %v419_v59  ;;  %v988_v59 = vmul.f32 %v987_v57, %v2442_v46  ;;  %v1001_v62 = vstv %s2445_s7  ;;  %s2515_s7 = sld [smem:[#allocation3 + $0x23]] }
 0x179   : > { %886 = vrot.lane.b32.xlu0 %v882_v61, %s1966_s4  ;;  %866 = vrot.lane.b32.xlu1 %v861_v63, %s1971_s25  ;;  %v975_v61 = vmul.f32 %v973_v47, %v2456_v58  ;;  %v1003_v16 = vmul.f32 %v1001_v62, %v2456_v58 }
 0x17b   : > { %v455_v7 = vpop.permute.xlu0 %454  ;;  %v443_v5 = vpop.permute.xlu1 %442 }
 0x17c   : > { %v460_v17 = vadd.f32 %v455_v7, %v446_v12  ;;  %v447_v26 = vadd.f32 %v443_v5, %v433_v18  ;;  %v1002_v7 = vmul.f32 %v1001_v62, %v2442_v46  ;;  %v1016_v12 = vmul.f32 %v1015_v8, %v2442_v46 }
 0x17d   : > { %900 = vrot.lane.b32.xlu0 %v896_v4, %s1967_s6  ;;  %888 = vrot.lane.b32.xlu1 %v883_v6, %s1966_s4  ;;  %v989_v6 = vmul.f32 %v987_v57, %v2456_v58  ;;  %v599_v18 = vstv %s2464_s17  ;;  %v1107_v62 = vstv %s2504_s30  ;;  %s2538_s17 = sld [smem:[#allocation3 + $0x48]]  ;;  %s2573_s30 = sld [smem:[#allocation3 + $0x4c]] }
 0x17e   : > { %v600_v24 = vmul.f32 %v599_v18, %v2249_v43 }
 0x17f   : > { %v469_v10 = vpop.permute.xlu0 %468  ;;  %v457_v13 = vpop.permute.xlu1 %456 }
 0x180   : > { %v474_v20 = vadd.f32 %v469_v10, %v460_v17  ;;  %v461_v30 = vadd.f32 %v457_v13, %v447_v26  ;;  %v1029_v17 = vstv %s2462_s14  ;;  %s2529_s14 = sld [smem:[#allocation3 + $0x47]] }
 0x181   : > { %914 = vrot.lane.b32.xlu0 %v910_v51, %s1968_s24  ;;  %902 = vrot.lane.b32.xlu1 %v897_v14, %s1967_s6 }
 0x183   : > { %v483_v19 = vpop.permute.xlu0 %482  ;;  %v471_v22 = vpop.permute.xlu1 %470 }
 0x184   : > { %v488_v29 = vadd.f32 %v483_v19, %v474_v20  ;;  %v475_v38 = vadd.f32 %v471_v22, %v461_v30  ;;  %v1043_v30 = vstv %s2471_s20  ;;  %s2547_s20 = sld [smem:[#allocation3 + $0x49]] }
 0x185   : > { %928 = vrot.lane.b32.xlu0 %v924_v28, %s1969_s8  ;;  %916 = vrot.lane.b32.xlu1 %v911_v23, %s1968_s24  ;;  %v1030_v23 = vmul.f32 %v1029_v17, %v2442_v46  ;;  %v1045_v47 = vmul.f32 %v1043_v30, %v2456_v58 }
 0x187   : > { %v497_v32 = vpop.permute.xlu0 %496  ;;  %v485_v34 = vpop.permute.xlu1 %484 }
 0x188   : > { %v502_v35 = vadd.f32 %v497_v32, %v488_v29  ;;  %v489_v40 = vadd.f32 %v485_v34, %v475_v38  ;;  %v1017_v29 = vmul.f32 %v1015_v8, %v2456_v58  ;;  %v1065_v38 = vstv %s2478_s23  ;;  %s2555_s23 = sld [smem:[#allocation3 + $0x4a]] }
 0x189   : > { %942 = vrot.lane.b32.xlu0 %v938_v33, %s1970_s16  ;;  %930 = vrot.lane.b32.xlu1 %v925_v36, %s1969_s8  ;;  %v1031_v36 = vmul.f32 %v1029_v17, %v2456_v58 }
 0x18a   : > { %v510_v39 = vadd.f32 %v508_v31, %v502_v35  ;;  %v1044_v35 = vmul.f32 %v1043_v30, %v2442_v46  ;;  %v2544_v30 = vld [vmem:[#allocation2 + $0x1b] sm:$0xff] }
 0x18b   : > { %v519_v41 = vpop.permute.xlu0 %518  ;;  %v499_v21 = vpop.permute.xlu1 %498 }
 0x18c   : > { %v503_v49 = vadd.f32 %v499_v21, %v489_v40  ;;  %v524_v63 = vadd.f32 %v519_v41, %v510_v39  ;;  %v601_v39 = vmul.f32 %v599_v18, %v2256_v50  ;;  %v1066_v21 = vmul.f32 %v1065_v38, %v2493_v37 }
 0x18d   : > { %956 = vrot.lane.b32.xlu0 %v952_v42, %s1971_s25  ;;  %944 = vrot.lane.b32.xlu1 %v939_v44, %s1970_s16 }
 0x18e   : > { %v511_v52 = vadd.f32 %v509_v48, %v503_v49  ;;  %v1079_v48 = vstv %s2487_s19  ;;  %v2507_v49 = vld [vmem:[#allocation2 + $0x22] sm:$0xff]  ;;  %s2564_s19 = sld [smem:[#allocation3 + $0x4b]] }
 0x18f   : > { %v533_v53 = vpop.permute.xlu0 %532  ;;  %v521_v54 = vpop.permute.xlu1 %520 }
 0x190   : > { %v538_v4 = vadd.f32 %v533_v53, %v524_v63  ;;  %v525_v10 = vadd.f32 %v521_v54, %v511_v52  ;;  %v1080_v52 = vmul.f32 %v1079_v48, %v2493_v37  ;;  %v1093_v54 = vstv %s2496_s29  ;;  %s2566_s29 = sld [smem:[#allocation3 + $0x2a]] }
 0x191   : > { %978 = vrot.lane.b32.xlu0 %v974_v1, %s1966_s4  ;;  %958 = vrot.lane.b32.xlu1 %v953_v56, %s1971_s25  ;;  %v1067_v1 = vmul.f32 %v1065_v38, %v2507_v49  ;;  %v1095_v8 = vmul.f32 %v1093_v54, %v2507_v49 }
 0x193   : > { %v547_v27 = vpop.permute.xlu0 %546  ;;  %v535_v60 = vpop.permute.xlu1 %534 }
 0x194   : > { %v552_v9 = vadd.f32 %v547_v27, %v538_v4  ;;  %v539_v19 = vadd.f32 %v535_v60, %v525_v10  ;;  %v1094_v27 = vmul.f32 %v1093_v54, %v2493_v37  ;;  %v1108_v4 = vmul.f32 %v1107_v62, %v2493_v37 }
 0x195   : > { %992 = vrot.lane.b32.xlu0 %v988_v59, %s1967_s6  ;;  %980 = vrot.lane.b32.xlu1 %v975_v61, %s1966_s4  ;;  %v1081_v61 = vmul.f32 %v1079_v48, %v2507_v49  ;;  %v691_v10 = vstv %s2515_s7  ;;  %v1199_v54 = vstv %s2555_s23  ;;  %s2589_s7 = sld [smem:[#allocation3 + $0x4f]]  ;;  %s2624_s23 = sld [smem:[#allocation3 + $0x53]] }
 0x196   : > { %v692_v17 = vmul.f32 %v691_v10, %v2285_v3 }
 0x197   : > { %v561_v0 = vpop.permute.xlu0 %560  ;;  %v549_v5 = vpop.permute.xlu1 %548 }
 0x198   : > { %v566_v13 = vadd.f32 %v561_v0, %v552_v9  ;;  %v553_v20 = vadd.f32 %v549_v5, %v539_v19  ;;  %v1121_v9 = vstv %s2513_s5  ;;  %s2580_s5 = sld [smem:[#allocation3 + $0x4e]] }
 0x199   : > { %1006 = vrot.lane.b32.xlu0 %v1002_v7, %s1968_s24  ;;  %994 = vrot.lane.b32.xlu1 %v989_v6, %s1967_s6 }
 0x19b   : > { %v575_v51 = vpop.permute.xlu0 %574  ;;  %v563_v14 = vpop.permute.xlu1 %562 }
 0x19c   : > { %v580_v28 = vadd.f32 %v575_v51, %v566_v13  ;;  %v567_v32 = vadd.f32 %v563_v14, %v553_v20  ;;  %v1135_v20 = vstv %s2522_s27  ;;  %s2598_s27 = sld [smem:[#allocation3 + $0x50]] }
 0x19d   : > { %1020 = vrot.lane.b32.xlu0 %v1016_v12, %s1969_s8  ;;  %1008 = vrot.lane.b32.xlu1 %v1003_v16, %s1968_s24  ;;  %v1122_v16 = vmul.f32 %v1121_v9, %v2493_v37  ;;  %v1137_v38 = vmul.f32 %v1135_v20, %v2507_v49 }
 0x19f   : > { %v589_v22 = vpop.permute.xlu0 %588  ;;  %v577_v25 = vpop.permute.xlu1 %576 }
 0x1a0   : > { %v594_v26 = vadd.f32 %v589_v22, %v580_v28  ;;  %v581_v31 = vadd.f32 %v577_v25, %v567_v32  ;;  %v1109_v28 = vmul.f32 %v1107_v62, %v2507_v49  ;;  %v1157_v32 = vstv %s2529_s14  ;;  %s2606_s14 = sld [smem:[#allocation3 + $0x51]] }
 0x1a1   : > { %1034 = vrot.lane.b32.xlu0 %v1030_v23, %s1970_s16  ;;  %1022 = vrot.lane.b32.xlu1 %v1017_v29, %s1969_s8  ;;  %v1123_v29 = vmul.f32 %v1121_v9, %v2507_v49 }
 0x1a2   : > { %v602_v33 = vadd.f32 %v600_v24, %v594_v26  ;;  %v1136_v26 = vmul.f32 %v1135_v20, %v2493_v37 }
 0x1a3   : > { %v611_v34 = vpop.permute.xlu0 %610  ;;  %v591_v43 = vpop.permute.xlu1 %590 }
 0x1a4   : > { %v595_v40 = vadd.f32 %v591_v43, %v581_v31  ;;  %v616_v56 = vadd.f32 %v611_v34, %v602_v33  ;;  %v693_v33 = vmul.f32 %v691_v10, %v2301_v15  ;;  %v1158_v43 = vmul.f32 %v1157_v32, %v2544_v30 }
 0x1a5   : > { %1048 = vrot.lane.b32.xlu0 %v1044_v35, %s1971_s25  ;;  %1036 = vrot.lane.b32.xlu1 %v1031_v36, %s1970_s16 }
 0x1a6   : > { %v603_v41 = vadd.f32 %v601_v39, %v595_v40  ;;  %v1171_v39 = vstv %s2538_s17  ;;  %v2558_v40 = vld [vmem:[#allocation2 + $0x23] sm:$0xff]  ;;  %s2615_s17 = sld [smem:[#allocation3 + $0x52]] }
 0x1a7   : > { %v625_v42 = vpop.permute.xlu0 %624  ;;  %v613_v44 = vpop.permute.xlu1 %612 }
 0x1a8   : > { %v630_v59 = vadd.f32 %v625_v42, %v616_v56  ;;  %v617_v0 = vadd.f32 %v613_v44, %v603_v41  ;;  %v1172_v41 = vmul.f32 %v1171_v39, %v2544_v30  ;;  %v1185_v44 = vstv %s2547_s20  ;;  %s2618_s20 = sld [smem:[#allocation3 + $0x31]] }
 0x1a9   : > { %1070 = vrot.lane.b32.xlu0 %v1066_v21, %s1966_s4  ;;  %1050 = vrot.lane.b32.xlu1 %v1045_v47, %s1971_s25  ;;  %v1159_v21 = vmul.f32 %v1157_v32, %v2558_v40  ;;  %v1187_v62 = vmul.f32 %v1185_v44, %v2558_v40 }
 0x1ab   : > { %v639_v50 = vpop.permute.xlu0 %638  ;;  %v627_v53 = vpop.permute.xlu1 %626 }
 0x1ac   : > { %v644_v63 = vadd.f32 %v639_v50, %v630_v59  ;;  %v631_v51 = vadd.f32 %v627_v53, %v617_v0  ;;  %v1186_v50 = vmul.f32 %v1185_v44, %v2544_v30  ;;  %v1200_v59 = vmul.f32 %v1199_v54, %v2544_v30 }
 0x1ad   : > { %1084 = vrot.lane.b32.xlu0 %v1080_v52, %s1967_s6  ;;  %1072 = vrot.lane.b32.xlu1 %v1067_v1, %s1966_s4  ;;  %v1173_v1 = vmul.f32 %v1171_v39, %v2558_v40  ;;  %v783_v0 = vstv %s2566_s29  ;;  %s2640_s29 = sld [smem:[#allocation3 + $0x56]] }
 0x1ae   : > { %v784_v9 = vmul.f32 %v783_v0, %v2339_v45 }
 0x1af   : > { %v653_v57 = vpop.permute.xlu0 %652  ;;  %v641_v60 = vpop.permute.xlu1 %640 }
 0x1b0   : > { %v658_v5 = vadd.f32 %v653_v57, %v644_v63  ;;  %v645_v13 = vadd.f32 %v641_v60, %v631_v51  ;;  %v1213_v63 = vstv %s2564_s19  ;;  %s2631_s19 = sld [smem:[#allocation3 + $0x55]] }
 0x1b1   : > { %1098 = vrot.lane.b32.xlu0 %v1094_v27, %s1968_s24  ;;  %1086 = vrot.lane.b32.xlu1 %v1081_v61, %s1967_s6  ;;  %v1215_v20 = vmul.f32 %v1213_v63, %v2558_v40 }
 0x1b3   : > { %v667_v7 = vpop.permute.xlu0 %666  ;;  %v655_v6 = vpop.permute.xlu1 %654 }
 0x1b4   : > { %v672_v12 = vadd.f32 %v667_v7, %v658_v5  ;;  %v659_v22 = vadd.f32 %v655_v6, %v645_v13  ;;  %v1227_v13 = vstv %s2573_s30  ;;  %s2649_s30 = sld [smem:[#allocation3 + $0x57]] }
 0x1b5   : > { %1112 = vrot.lane.b32.xlu0 %v1108_v4, %s1969_s8  ;;  %1100 = vrot.lane.b32.xlu1 %v1095_v8, %s1968_s24  ;;  %v1214_v8 = vmul.f32 %v1213_v63, %v2544_v30 }
 0x1b7   : > { %v681_v14 = vpop.permute.xlu0 %680  ;;  %v669_v18 = vpop.permute.xlu1 %668 }
 0x1b8   : > { %v686_v19 = vadd.f32 %v681_v14, %v672_v12  ;;  %v673_v24 = vadd.f32 %v669_v18, %v659_v22  ;;  %v1201_v12 = vmul.f32 %v1199_v54, %v2558_v40  ;;  %v2595_v22 = vld [vmem:[#allocation2 + $0x1c] sm:$0xff] }
 0x1b9   : > { %1126 = vrot.lane.b32.xlu0 %v1122_v16, %s1970_s16  ;;  %1114 = vrot.lane.b32.xlu1 %v1109_v28, %s1969_s8 }
 0x1ba   : > { %v694_v23 = vadd.f32 %v692_v17, %v686_v19  ;;  %v1228_v19 = vmul.f32 %v1227_v13, %v2544_v30 }
 0x1bb   : > { %v703_v25 = vpop.permute.xlu0 %702  ;;  %v683_v3 = vpop.permute.xlu1 %682 }
 0x1bc   : > { %v687_v31 = vadd.f32 %v683_v3, %v673_v24  ;;  %v708_v47 = vadd.f32 %v703_v25, %v694_v23  ;;  %v1249_v23 = vstv %s2580_s5  ;;  %v785_v24 = vmul.f32 %v783_v0, %v2353_v11  ;;  %v2609_v11 = vld [vmem:[#allocation2 + $0x24] sm:$0xff]  ;;  %s2657_s5 = sld [smem:[#allocation3 + $0x58]] }
 0x1bd   : > { %1140 = vrot.lane.b32.xlu0 %v1136_v26, %s1971_s25  ;;  %1128 = vrot.lane.b32.xlu1 %v1123_v29, %s1970_s16  ;;  %v1250_v29 = vmul.f32 %v1249_v23, %v2595_v22 }
 0x1be   : > { %v695_v34 = vadd.f32 %v693_v33, %v687_v31  ;;  %v1229_v31 = vmul.f32 %v1227_v13, %v2558_v40 }
 0x1bf   : > { %v717_v35 = vpop.permute.xlu0 %716  ;;  %v705_v36 = vpop.permute.xlu1 %704 }
 0x1c0   : > { %v722_v52 = vadd.f32 %v717_v35, %v708_v47  ;;  %v709_v57 = vadd.f32 %v705_v36, %v695_v34  ;;  %v1263_v34 = vstv %s2589_s7  ;;  %s2666_s7 = sld [smem:[#allocation3 + $0x59]] }
 0x1c1   : > { %1162 = vrot.lane.b32.xlu0 %v1158_v43, %s1966_s4  ;;  %1142 = vrot.lane.b32.xlu1 %v1137_v38, %s1971_s25  ;;  %v1264_v36 = vmul.f32 %v1263_v34, %v2595_v22 }
 0x1c3   : > { %v731_v15 = vpop.permute.xlu0 %730  ;;  %v719_v42 = vpop.permute.xlu1 %718 }
 0x1c4   : > { %v736_v56 = vadd.f32 %v731_v15, %v722_v52  ;;  %v723_v7 = vadd.f32 %v719_v42, %v709_v57  ;;  %v1251_v15 = vmul.f32 %v1249_v23, %v2609_v11  ;;  %v1291_v52 = vstv %s2606_s14  ;;  %s2675_s14 = sld [smem:[#allocation3 + $0x5a]] }
 0x1c5   : > { %1176 = vrot.lane.b32.xlu0 %v1172_v41, %s1967_s6  ;;  %1164 = vrot.lane.b32.xlu1 %v1159_v21, %s1966_s4  ;;  %v1277_v41 = vstv %s2598_s27  ;;  %v1292_v54 = vmul.f32 %v1291_v52, %v2595_v22  ;;  %s2669_s27 = sld [smem:[#allocation3 + $0x38]] }
 0x1c6   : > { %v1278_v44 = vmul.f32 %v1277_v41, %v2595_v22 }
 0x1c7   : > { %v745_v48 = vpop.permute.xlu0 %744  ;;  %v733_v53 = vpop.permute.xlu1 %732 }
 0x1c8   : > { %v750_v60 = vadd.f32 %v745_v48, %v736_v56  ;;  %v737_v5 = vadd.f32 %v733_v53, %v723_v7 }
 0x1c9   : > { %1190 = vrot.lane.b32.xlu0 %v1186_v50, %s1968_s24  ;;  %1178 = vrot.lane.b32.xlu1 %v1173_v1, %s1967_s6  ;;  %v1265_v50 = vmul.f32 %v1263_v34, %v2609_v11  ;;  %v1369_v34 = vstv %s2649_s30  ;;  %s2720_s30 = sld [smem:[#allocation3 + $0x3f]] }
 0x1cb   : > { %v759_v27 = vpop.permute.xlu0 %758  ;;  %v747_v61 = vpop.permute.xlu1 %746 }
 0x1cc   : > { %v764_v4 = vadd.f32 %v759_v27, %v750_v60  ;;  %v751_v14 = vadd.f32 %v747_v61, %v737_v5  ;;  %v1279_v27 = vmul.f32 %v1277_v41, %v2609_v11  ;;  %v875_v61 = vstv %s2618_s20  ;;  %s2691_s20 = sld [smem:[#allocation3 + $0x5d]] }
 0x1cd   : > { %1204 = vrot.lane.b32.xlu0 %v1200_v59, %s1969_s8  ;;  %1192 = vrot.lane.b32.xlu1 %v1187_v62, %s1968_s24  ;;  %v1305_v59 = vstv %s2615_s17  ;;  %v876_v7 = vmul.f32 %v875_v61, %v2391_v55  ;;  %v1293_v5 = vmul.f32 %v1291_v52, %v2609_v11  ;;  %v1383_v41 = vstv %s2657_s5  ;;  %s2682_s17 = sld [smem:[#allocation3 + $0x5c]]  ;;  %s2726_s5 = sld [smem:[#allocation3 + $0x61]] }
 0x1ce   : > { %v1306_v63 = vmul.f32 %v1305_v59, %v2595_v22  ;;  %v1307_v55 = vmul.f32 %v1305_v59, %v2609_v11 }
 0x1cf   : > { %v773_v6 = vpop.permute.xlu0 %772  ;;  %v761_v10 = vpop.permute.xlu1 %760 }
 0x1d0   : > { %v778_v51 = vadd.f32 %v773_v6, %v764_v4  ;;  %v765_v17 = vadd.f32 %v761_v10, %v751_v14  ;;  %v1319_v6 = vstv %s2624_s23  ;;  %v2646_v14 = vld [vmem:[#allocation2 + $0x1d] sm:$0xff]  ;;  %s2700_s23 = sld [smem:[#allocation3 + $0x5e]] }
 0x1d1   : > { %1218 = vrot.lane.b32.xlu0 %v1214_v8, %s1970_s16  ;;  %1206 = vrot.lane.b32.xlu1 %v1201_v12, %s1969_s8 }
 0x1d2   : > { %v786_v16 = vadd.f32 %v784_v9, %v778_v51  ;;  %v1320_v51 = vmul.f32 %v1319_v6, %v2595_v22 }
 0x1d3   : > { %v795_v18 = vpop.permute.xlu0 %794  ;;  %v775_v28 = vpop.permute.xlu1 %774 }
 0x1d4   : > { %v800_v45 = vadd.f32 %v795_v18, %v786_v16  ;;  %v779_v25 = vadd.f32 %v775_v28, %v765_v17  ;;  %v1341_v16 = vstv %s2631_s19  ;;  %v877_v17 = vmul.f32 %v875_v61, %v2405_v2  ;;  %v2660_v2 = vld [vmem:[#allocation2 + $0x25] sm:$0xff]  ;;  %s2708_s19 = sld [smem:[#allocation3 + $0x5f]] }
 0x1d5   : > { %1232 = vrot.lane.b32.xlu0 %v1228_v19, %s1971_s25  ;;  %1220 = vrot.lane.b32.xlu1 %v1215_v20, %s1970_s16  ;;  %v1411_v61 = vstv %s2675_s14 }
 0x1d6   : > { %v787_v26 = vadd.f32 %v785_v24, %v779_v25  ;;  %v1321_v24 = vmul.f32 %v1319_v6, %v2609_v11  ;;  %v1355_v25 = vstv %s2640_s29  ;;  %v1433_v6 = vstv %s2682_s17  ;;  %s2717_s29 = sld [smem:[#allocation3 + $0x60]] }
 0x1d7   : > { %v809_v3 = vpop.permute.xlu0 %808  ;;  %v797_v32 = vpop.permute.xlu1 %796 }
 0x1d8   : > { %v814_v33 = vadd.f32 %v809_v3, %v800_v45  ;;  %v801_v35 = vadd.f32 %v797_v32, %v787_v26  ;;  %v1342_v45 = vmul.f32 %v1341_v16, %v2646_v14 }
 0x1d9   : > { %1254 = vrot.lane.b32.xlu0 %v1250_v29, %s1966_s4  ;;  %1234 = vrot.lane.b32.xlu1 %v1229_v31, %s1971_s25  ;;  %v1356_v29 = vmul.f32 %v1355_v25, %v2646_v14  ;;  %v1343_v31 = vmul.f32 %v1341_v16, %v2660_v2  ;;  %v1447_v16 = vstv %s2691_s20  ;;  %s1972_s20 = smov [#allocation8]  }
 0x1db   : > { %v823_v43 = vpop.permute.xlu0 %822  ;;  %v811_v38 = vpop.permute.xlu1 %810 }
 0x1dc   : > { %v828_v39 = vadd.f32 %v823_v43, %v814_v33  ;;  %v815_v42 = vadd.f32 %v811_v38, %v801_v35 }
 0x1dd   : > { %1268 = vrot.lane.b32.xlu0 %v1264_v36, %s1967_s6  ;;  %1256 = vrot.lane.b32.xlu1 %v1251_v15, %s1966_s4  ;;  %v1370_v36 = vmul.f32 %v1369_v34, %v2646_v14  ;;  %v1357_v15 = vmul.f32 %v1355_v25, %v2660_v2 }
 0x1df   : > { %v837_v21 = vpop.permute.xlu0 %836  ;;  %v825_v47 = vpop.permute.xlu1 %824 }
 0x1e0   : > { %v842_v48 = vadd.f32 %v837_v21, %v828_v39  ;;  %v829_v53 = vadd.f32 %v825_v47, %v815_v42 }
 0x1e1   : > { %1282 = vrot.lane.b32.xlu0 %v1278_v44, %s1968_s24  ;;  %1270 = vrot.lane.b32.xlu1 %v1265_v50, %s1967_s6  ;;  %v1384_v44 = vmul.f32 %v1383_v41, %v2646_v14  ;;  %v1397_v50 = vstv %s2666_s7 }
 0x1e3   : > { %v851_v1 = vpop.permute.xlu0 %850  ;;  %v839_v56 = vpop.permute.xlu1 %838 }
 0x1e4   : > { %v856_v57 = vadd.f32 %v851_v1, %v842_v48  ;;  %v843_v60 = vadd.f32 %v839_v56, %v829_v53  ;;  %v1371_v48 = vmul.f32 %v1369_v34, %v2660_v2  ;;  %v967_v53 = vstv %s2669_s27 }
 0x1e5   : > { %1296 = vrot.lane.b32.xlu0 %v1292_v54, %s1969_s8  ;;  %1284 = vrot.lane.b32.xlu1 %v1279_v27, %s1968_s24  ;;  %v1398_v56 = vmul.f32 %v1397_v50, %v2646_v14  ;;  %v968_v27 = vmul.f32 %v967_v53, %v2442_v46  ;;  %v2697_v46 = vld [vmem:[#allocation2 + $0x1e] sm:$0xff] }
 0x1e7   : > { %v865_v62 = vpop.permute.xlu0 %864  ;;  %v853_v0 = vpop.permute.xlu1 %852 }
 0x1e8   : > { %v870_v4 = vadd.f32 %v865_v62, %v856_v57  ;;  %v857_v8 = vadd.f32 %v853_v0, %v843_v60  ;;  %v1385_v60 = vmul.f32 %v1383_v41, %v2660_v2 }
 0x1e9   : > { %1310 = vrot.lane.b32.xlu0 %v1306_v63, %s1970_s16  ;;  %1298 = vrot.lane.b32.xlu1 %v1293_v5, %s1969_s8  ;;  %v1399_v5 = vmul.f32 %v1397_v50, %v2660_v2 }
 0x1ea   : > { %v878_v9 = vadd.f32 %v876_v7, %v870_v4  ;;  %v1412_v7 = vmul.f32 %v1411_v61, %v2646_v14 }
 0x1eb   : > { %v887_v10 = vpop.permute.xlu0 %886  ;;  %v867_v12 = vpop.permute.xlu1 %866 }
 0x1ec   : > { %v892_v13 = vadd.f32 %v887_v10, %v878_v9  ;;  %v871_v18 = vadd.f32 %v867_v12, %v857_v8  ;;  %v969_v8 = vmul.f32 %v967_v53, %v2456_v58  ;;  %v1434_v12 = vmul.f32 %v1433_v6, %v2697_v46 }
 0x1ed   : > { %1324 = vrot.lane.b32.xlu0 %v1320_v51, %s1971_s25  ;;  %1312 = vrot.lane.b32.xlu1 %v1307_v55, %s1970_s16  ;;  %v1413_v55 = vmul.f32 %v1411_v61, %v2660_v2  ;;  %v1503_v53 = vstv %s2726_s5 }
 0x1ee   : > { %v879_v19 = vadd.f32 %v877_v17, %v871_v18  ;;  %v2711_v17 = vld [vmem:[#allocation2 + $0x26] sm:$0xff]  ;;  %v1448_v18 = vmul.f32 %v1447_v16, %v2697_v46 }
 0x1ef   : > { %v901_v28 = vpop.permute.xlu0 %900  ;;  %v889_v20 = vpop.permute.xlu1 %888 }
 0x1f0   : > { %v906_v23 = vadd.f32 %v901_v28, %v892_v13  ;;  %v893_v26 = vadd.f32 %v889_v20, %v879_v19  ;;  %v1435_v28 = vmul.f32 %v1433_v6, %v2711_v17 }
 0x1f1   : > { %1346 = vrot.lane.b32.xlu0 %v1342_v45, %s1966_s4  ;;  %1326 = vrot.lane.b32.xlu1 %v1321_v24, %s1971_s25  ;;  %v1461_v45 = vstv %s2700_s23  ;;  %s1892_s23 = sshll.u32 %s1972_s20, 4  ;;  %s1893_s23 = int_to_ptr.vmem [resolvable:$false] %s1892_s23 }
 0x1f2   : > { %v1462_v24 = vmul.f32 %v1461_v45, %v2697_v46 }
 0x1f3   : > { %v915_v3 = vpop.permute.xlu0 %914  ;;  %v903_v32 = vpop.permute.xlu1 %902 }
 0x1f4   : > { %v920_v33 = vadd.f32 %v915_v3, %v906_v23  ;;  %v907_v35 = vadd.f32 %v903_v32, %v893_v26  ;;  %v1449_v3 = vmul.f32 %v1447_v16, %v2711_v17 }
 0x1f5   : > { %1360 = vrot.lane.b32.xlu0 %v1356_v29, %s1967_s6  ;;  %1348 = vrot.lane.b32.xlu1 %v1343_v31, %s1966_s4  ;;  %v1475_v29 = vstv %s2708_s19  ;;  %s1894_s19 = scalar_lea.vmem %s1893_s23, 2048 }
 0x1f6   : > { %v1476_v34 = vmul.f32 %v1475_v29, %v2697_v46 }
 0x1f7   : > { %v929_v43 = vpop.permute.xlu0 %928  ;;  %v917_v38 = vpop.permute.xlu1 %916 }
 0x1f8   : > { %v934_v39 = vadd.f32 %v929_v43, %v920_v33  ;;  %v921_v42 = vadd.f32 %v917_v38, %v907_v35  ;;  %v1489_v38 = vstv %s2717_s29 }
 0x1f9   : > { %1374 = vrot.lane.b32.xlu0 %v1370_v36, %s1968_s24  ;;  %1362 = vrot.lane.b32.xlu1 %v1357_v15, %s1967_s6  ;;  %v1463_v36 = vmul.f32 %v1461_v45, %v2711_v17  ;;  %v1059_v15 = vstv %s2720_s30 }
 0x1fa   : > { %v1061_v61 = vmul.f32 %v1059_v15, %v2507_v49 }
 0x1fb   : > { %v943_v21 = vpop.permute.xlu0 %942  ;;  %v931_v47 = vpop.permute.xlu1 %930 }
 0x1fc   : > { %v935_v52 = vadd.f32 %v931_v47, %v921_v42  ;;  %v948_v1 = vadd.f32 %v943_v21, %v934_v39 }
 0x1fd   : > { %1388 = vrot.lane.b32.xlu0 %v1384_v44, %s1969_s8  ;;  %1376 = vrot.lane.b32.xlu1 %v1371_v48, %s1968_s24  ;;  %v1490_v44 = vmul.f32 %v1489_v38, %v2697_v46  ;;  %v1060_v48 = vmul.f32 %v1059_v15, %v2493_v37 }
 0x1ff   : > { %v957_v54 = vpop.permute.xlu0 %956  ;;  %v945_v57 = vpop.permute.xlu1 %944 }
 0x200   : > { %v962_v59 = vadd.f32 %v957_v54, %v948_v1  ;;  %v949_v63 = vadd.f32 %v945_v57, %v935_v52  ;;  %v1477_v52 = vmul.f32 %v1475_v29, %v2711_v17 }
 0x201   : > { %1402 = vrot.lane.b32.xlu0 %v1398_v56, %s1970_s16  ;;  %1390 = vrot.lane.b32.xlu1 %v1385_v60, %s1969_s8  ;;  %v1491_v60 = vmul.f32 %v1489_v38, %v2711_v17 }
 0x202   : > { %v970_v62 = vadd.f32 %v968_v27, %v962_v59  ;;  %v1504_v27 = vmul.f32 %v1503_v53, %v2697_v46 }
 0x203   : > { %v979_v0 = vpop.permute.xlu0 %978  ;;  %v959_v4 = vpop.permute.xlu1 %958 }
 0x204   : > { %v963_v9 = vadd.f32 %v959_v4, %v949_v63  ;;  %v984_v20 = vadd.f32 %v979_v0, %v970_v62 }
 0x205   : > { %1416 = vrot.lane.b32.xlu0 %v1412_v7, %s1971_s25  ;;  %1404 = vrot.lane.b32.xlu1 %v1399_v5, %s1970_s16  ;;  %v1505_v7 = vmul.f32 %v1503_v53, %v2711_v17 }
 0x206   : > { %v971_v10 = vadd.f32 %v969_v8, %v963_v9 }
 0x207   : > { %v993_v51 = vpop.permute.xlu0 %992  ;;  %v981_v13 = vpop.permute.xlu1 %980 }
 0x208   : > { %v998_v25 = vadd.f32 %v993_v51, %v984_v20  ;;  %v985_v33 = vadd.f32 %v981_v13, %v971_v10 }
 0x209   : > { %1438 = vrot.lane.b32.xlu0 %v1434_v12, %s1966_s4  ;;  %1418 = vrot.lane.b32.xlu1 %v1413_v55, %s1971_s25 }
 0x20b   : > { %v1007_v58 = vpop.permute.xlu0 %1006  ;;  %v995_v19 = vpop.permute.xlu1 %994 }
 0x20c   : > { %v1012_v32 = vadd.f32 %v1007_v58, %v998_v25  ;;  %v999_v39 = vadd.f32 %v995_v19, %v985_v33 }
 0x20d   : > { %1452 = vrot.lane.b32.xlu0 %v1448_v18, %s1967_s6  ;;  %1440 = vrot.lane.b32.xlu1 %v1435_v28, %s1966_s4  ;;  %s1725_s4 = sld [smem:[#allocation3 + $0x46]] }
 0x20f   : > { %v1021_v23 = vpop.permute.xlu0 %1020  ;;  %v1009_v26 = vpop.permute.xlu1 %1008 }
 0x210   : > { %v1026_v35 = vadd.f32 %v1021_v23, %v1012_v32  ;;  %v1013_v42 = vadd.f32 %v1009_v26, %v999_v39 }
 0x211   : > { %1466 = vrot.lane.b32.xlu0 %v1462_v24, %s1968_s24  ;;  %1454 = vrot.lane.b32.xlu1 %v1449_v3, %s1967_s6  ;;  %s1732_s6 = sld [smem:[#allocation3 + $0x4d]] }
 0x213   : > { %v1035_v31 = vpop.permute.xlu0 %1034  ;;  %v1023_v43 = vpop.permute.xlu1 %1022  ;;  %v1151_v58 = vstv %s1725_s4 }
 0x214   : > { %v1040_v41 = vadd.f32 %v1035_v31, %v1026_v35  ;;  %v1027_v1 = vadd.f32 %v1023_v43, %v1013_v42  ;;  %v1152_v23 = vmul.f32 %v1151_v58, %v2544_v30  ;;  %v1153_v33 = vmul.f32 %v1151_v58, %v2558_v40 }
 0x215   : > { %1480 = vrot.lane.b32.xlu0 %v1476_v34, %s1969_s8  ;;  %1468 = vrot.lane.b32.xlu1 %v1463_v36, %s1968_s24  ;;  %s1739_s24 = sld [smem:[#allocation3 + $0x54]] }
 0x217   : > { %v1049_v21 = vpop.permute.xlu0 %1048  ;;  %v1037_v47 = vpop.permute.xlu1 %1036 }
 0x218   : > { %v1054_v50 = vadd.f32 %v1049_v21, %v1040_v41  ;;  %v1041_v56 = vadd.f32 %v1037_v47, %v1027_v1 }
 0x219   : > { %1494 = vrot.lane.b32.xlu0 %v1490_v44, %s1970_s16  ;;  %1482 = vrot.lane.b32.xlu1 %v1477_v52, %s1969_s8  ;;  %s1746_s8 = sld [smem:[#allocation3 + $0x5b]] }
 0x21a   : > { %v1062_v54 = vadd.f32 %v1060_v48, %v1054_v50  ;;  %v1243_v50 = vstv %s1732_s6 }
 0x21b   : > { %v1071_v57 = vpop.permute.xlu0 %1070  ;;  %v1051_v59 = vpop.permute.xlu1 %1050 }
 0x21c   : > { %v1055_v37 = vadd.f32 %v1051_v59, %v1041_v56  ;;  %v1076_v6 = vadd.f32 %v1071_v57, %v1062_v54  ;;  %v1244_v56 = vmul.f32 %v1243_v50, %v2595_v22 }
 0x21d   : > { %1508 = vrot.lane.b32.xlu0 %v1504_v27, %s1971_s25  ;;  %1496 = vrot.lane.b32.xlu1 %v1491_v60, %s1970_s16  ;;  %s1759_s16 = sshll.u32 %s2011_s13, 10  ;;  %s1546_s13 = scalar_lea.sflag [#allocation5], %s2122_s28 }
 0x21e   : > { %v1063_v62 = vadd.f32 %v1061_v61, %v1055_v37  ;;  %s2771_s17 = scalar_lea.hbm %s2827_s2, %s1759_s16 }
 0x21f   : > { %v1085_v63 = vpop.permute.xlu0 %1084  ;;  %v1073_v0 = vpop.permute.xlu1 %1072 }
 0x220   : > { %v1090_v9 = vadd.f32 %v1085_v63, %v1076_v6  ;;  %v1077_v51 = vadd.f32 %v1073_v0, %v1063_v62  ;;  %v1245_v62 = vmul.f32 %v1243_v50, %v2609_v11 }
 0x221   : > { %1510 = vrot.lane.b32.xlu1 %v1505_v7, %s1971_s25  ;;  %s173_s25 = scalar_lea.vmem [#allocation8], %s1653_s3 }
 0x222   : > { %s1559_s7 = sshll.u32 %s173_s25, 4  ;;  %s2773_s7 = int_to_ptr.vmem [resolvable:$true] %s1559_s7 }
 0x223   : > { %v1099_v4 = vpop.permute.xlu0 %1098  ;;  %v1087_v5 = vpop.permute.xlu1 %1086  ;;  %s1888_s3 = scalar_lea.vmem %s2773_s7, 1024  ;;  %p1895_p6 = scmp.lt.s32.totalorder %s2773_s7, %s1893_s23 }
 0x224   : > { %v1104_v49 = vadd.f32 %v1099_v4, %v1090_v9  ;;  %v1091_v16 = vadd.f32 %v1087_v5, %v1077_v51  ;;  %p1889_p12 = scmp.ne.s32.totalorder %s2773_s7, %s1888_s3  ;;  %p1896_p4 = scmp.lt.s32.totalorder %s1894_s19, %s1888_s3 }
 0x226   : > { %p1890_p7 = pnand %p1889_p12, %p2841_p13  ;;  %p1897_p5 = por %p1896_p4, %p1895_p6 }
 0x227   : > { %v1113_v8 = vpop.permute.xlu0 %1112  ;;  %v1101_v10 = vpop.permute.xlu1 %1100 }
 0x228   : > { %v1118_v13 = vadd.f32 %v1113_v8, %v1104_v49  ;;  %v1105_v19 = vadd.f32 %v1101_v10, %v1091_v16  ;;  %v1335_v16 = vstv %s1739_s24  ;;  %p1891_p3 = pneg %p1890_p7 }
 0x22a   : > { %p1898_p0 = pnand %p1897_p5, %p1891_p3 }
 0x22b   : > { %v1127_v12 = vpop.permute.xlu0 %1126  ;;  %v1115_v55 = vpop.permute.xlu1 %1114 }
 0x22c   : > { %v1132_v18 = vadd.f32 %v1127_v12, %v1118_v13  ;;  %v1119_v24 = vadd.f32 %v1115_v55, %v1105_v19 }
 0x22f   : > { %v1141_v28 = vpop.permute.xlu0 %1140  ;;  %v1129_v45 = vpop.permute.xlu1 %1128 }
 0x230   : > { %v1146_v20 = vadd.f32 %v1141_v28, %v1132_v18  ;;  %v1133_v26 = vadd.f32 %v1129_v45, %v1119_v24  ;;  %v1336_v45 = vmul.f32 %v1335_v16, %v2646_v14 }
 0x232   : > { %v1154_v25 = vadd.f32 %v1152_v23, %v1146_v20 }
 0x233   : > { %v1163_v3 = vpop.permute.xlu0 %1162  ;;  %v1143_v29 = vpop.permute.xlu1 %1142 }
 0x234   : > { %v1147_v32 = vadd.f32 %v1143_v29, %v1133_v26  ;;  %v1168_v38 = vadd.f32 %v1163_v3, %v1154_v25  ;;  %v1337_v29 = vmul.f32 %v1335_v16, %v2660_v2 }
 0x236   : > { %v1155_v31 = vadd.f32 %v1153_v33, %v1147_v32 }
 0x237   : > { %v1177_v34 = vpop.permute.xlu0 %1176  ;;  %v1165_v35 = vpop.permute.xlu1 %1164 }
 0x238   : > { %v1182_v15 = vadd.f32 %v1177_v34, %v1168_v38  ;;  %v1169_v30 = vadd.f32 %v1165_v35, %v1155_v31 }
 0x23b   : > { %v1191_v43 = vpop.permute.xlu0 %1190  ;;  %v1179_v36 = vpop.permute.xlu1 %1178 }
 0x23c   : > { %v1196_v42 = vadd.f32 %v1191_v43, %v1182_v15  ;;  %v1183_v48 = vadd.f32 %v1179_v36, %v1169_v30 }
 0x23f   : > { %v1205_v39 = vpop.permute.xlu0 %1204  ;;  %v1193_v41 = vpop.permute.xlu1 %1192 }
 0x240   : > { %v1210_v44 = vadd.f32 %v1205_v39, %v1196_v42  ;;  %v1197_v53 = vadd.f32 %v1193_v41, %v1183_v48 }
 0x243   : > { %v1219_v21 = vpop.permute.xlu0 %1218  ;;  %v1207_v47 = vpop.permute.xlu1 %1206 }
 0x244   : > { %v1224_v52 = vadd.f32 %v1219_v21, %v1210_v44  ;;  %v1211_v57 = vadd.f32 %v1207_v47, %v1197_v53  ;;  %v1427_v44 = vstv %s1746_s8 }
 0x245   : > { %v1428_v53 = vmul.f32 %v1427_v44, %v2697_v46 }
 0x247   : > { %v1233_v40 = vpop.permute.xlu0 %1232  ;;  %v1221_v1 = vpop.permute.xlu1 %1220 }
 0x248   : > { %v1238_v54 = vadd.f32 %v1233_v40, %v1224_v52  ;;  %v1225_v59 = vadd.f32 %v1221_v1, %v1211_v57 }
 0x24a   : > { %v1246_v27 = vadd.f32 %v1244_v56, %v1238_v54 }
 0x24b   : > { %v1255_v60 = vpop.permute.xlu0 %1254  ;;  %v1235_v61 = vpop.permute.xlu1 %1234 }
 0x24c   : > { %v1239_v37 = vadd.f32 %v1235_v61, %v1225_v59  ;;  %v1260_v6 = vadd.f32 %v1255_v60, %v1246_v27  ;;  %v1429_v59 = vmul.f32 %v1427_v44, %v2711_v17 }
 0x24e   : > { %v1247_v63 = vadd.f32 %v1245_v62, %v1239_v37 }
 0x24f   : > { %v1269_v0 = vpop.permute.xlu0 %1268  ;;  %v1257_v7 = vpop.permute.xlu1 %1256 }
 0x250   : > { %v1274_v9 = vadd.f32 %v1269_v0, %v1260_v6  ;;  %v1261_v22 = vadd.f32 %v1257_v7, %v1247_v63 }
 0x253   : > { %v1283_v4 = vpop.permute.xlu0 %1282  ;;  %v1271_v5 = vpop.permute.xlu1 %1270 }
 0x254   : > { %v1288_v49 = vadd.f32 %v1283_v4, %v1274_v9  ;;  %v1275_v55 = vadd.f32 %v1271_v5, %v1261_v22 }
 0x257   : > { %v1297_v8 = vpop.permute.xlu0 %1296  ;;  %v1285_v10 = vpop.permute.xlu1 %1284 }
 0x258   : > { %v1302_v12 = vadd.f32 %v1297_v8, %v1288_v49  ;;  %v1289_v18 = vadd.f32 %v1285_v10, %v1275_v55 }
 0x25b   : > { %v1311_v51 = vpop.permute.xlu0 %1310  ;;  %v1299_v13 = vpop.permute.xlu1 %1298 }
 0x25c   : > { %v1316_v58 = vadd.f32 %v1311_v51, %v1302_v12  ;;  %v1303_v20 = vadd.f32 %v1299_v13, %v1289_v18 }
 0x25f   : > { %v1325_v11 = vpop.permute.xlu0 %1324  ;;  %v1313_v19 = vpop.permute.xlu1 %1312 }
 0x260   : > { %v1330_v28 = vadd.f32 %v1325_v11, %v1316_v58  ;;  %v1317_v24 = vadd.f32 %v1313_v19, %v1303_v20 }
 0x262   : > { %v1338_v23 = vadd.f32 %v1336_v45, %v1330_v28 }
 0x263   : > { %v1347_v25 = vpop.permute.xlu0 %1346  ;;  %v1327_v26 = vpop.permute.xlu1 %1326 }
 0x264   : > { %v1331_v3 = vadd.f32 %v1327_v26, %v1317_v24  ;;  %v1352_v43 = vadd.f32 %v1347_v25, %v1338_v23 }
 0x266   : > { %v1339_v32 = vadd.f32 %v1337_v29, %v1331_v3  ;;  %v1837_v3 = vld [vmem:[%s2128_s26] sm:$0xff] }
 0x267   : > { %v1361_v33 = vpop.permute.xlu0 %1360  ;;  %v1349_v31 = vpop.permute.xlu1 %1348 }
 0x268   : > { %v1366_v38 = vadd.f32 %v1361_v33, %v1352_v43  ;;  %v1353_v14 = vadd.f32 %v1349_v31, %v1339_v32  ;;  %v1838_v32 = vld [vmem:[%s2128_s26 + $0x10] sm:$0xff]  ;;  %v1839_v31 = vld [vmem:[%s2128_s26 + $0x20] sm:$0xff] }
 0x26b   : > { %v1375_v34 = vpop.permute.xlu0 %1374  ;;  %v1363_v35 = vpop.permute.xlu1 %1362 }
 0x26c   : > { %v1380_v15 = vadd.f32 %v1375_v34, %v1366_v38  ;;  %v1367_v21 = vadd.f32 %v1363_v35, %v1353_v14  ;;  %v1840_v35 = vld [vmem:[%s2128_s26 + $0x30] sm:$0xff]  ;;  %v1841_v38 = vld [vmem:[%s2128_s26 + $0x8] sm:$0xff] }
 0x26f   : > { %v1389_v36 = vpop.permute.xlu0 %1388  ;;  %v1377_v39 = vpop.permute.xlu1 %1376 }
 0x270   : > { %v1394_v42 = vadd.f32 %v1389_v36, %v1380_v15  ;;  %v1381_v48 = vadd.f32 %v1377_v39, %v1367_v21  ;;  %v1842_v15 = vld [vmem:[%s2128_s26 + $0x18] sm:$0xff] }
 0x273   : > { %v1403_v41 = vpop.permute.xlu0 %1402  ;;  %v1391_v30 = vpop.permute.xlu1 %1390 }
 0x274   : > { %v1408_v47 = vadd.f32 %v1403_v41, %v1394_v42  ;;  %v1395_v40 = vadd.f32 %v1391_v30, %v1381_v48  ;;  %v1843_v41 = vld [vmem:[%s2128_s26 + $0x28] sm:$0xff]  ;;  %v1844_v30 = vld [vmem:[%s2128_s26 + $0x38] sm:$0xff] }
 0x277   : > { %v1417_v2 = vpop.permute.xlu0 %1416  ;;  %v1405_v50 = vpop.permute.xlu1 %1404 }
 0x278   : > { %v1422_v52 = vadd.f32 %v1417_v2, %v1408_v47  ;;  %v1409_v54 = vadd.f32 %v1405_v50, %v1395_v40 }
 0x27a   : > { %v1430_v1 = vadd.f32 %v1428_v53, %v1422_v52 }
 0x27b   : > { %v1439_v56 = vpop.permute.xlu0 %1438  ;;  %v1419_v57 = vpop.permute.xlu1 %1418 }
 0x27c   : > { %v1423_v27 = vadd.f32 %v1419_v57, %v1409_v54  ;;  %v1444_v0 = vadd.f32 %v1439_v56, %v1430_v1 }
 0x27e   : > { %v1431_v60 = vadd.f32 %v1429_v59, %v1423_v27 }
 0x27f   : > { %v1453_v61 = vpop.permute.xlu0 %1452  ;;  %v1441_v37 = vpop.permute.xlu1 %1440 }
 0x280   : > { %v1458_v4 = vadd.f32 %v1453_v61, %v1444_v0  ;;  %v1445_v8 = vadd.f32 %v1441_v37, %v1431_v60 }
 0x283   : > { %v1467_v62 = vpop.permute.xlu0 %1466  ;;  %v1455_v63 = vpop.permute.xlu1 %1454 }
 0x284   : > { %v1472_v6 = vadd.f32 %v1467_v62, %v1458_v4  ;;  %v1459_v49 = vadd.f32 %v1455_v63, %v1445_v8 }
 0x287   : > { %v1481_v7 = vpop.permute.xlu0 %1480  ;;  %v1469_v5 = vpop.permute.xlu1 %1468 }
 0x288   : > { %v1486_v9 = vadd.f32 %v1481_v7, %v1472_v6  ;;  %v1473_v51 = vadd.f32 %v1469_v5, %v1459_v49 }
 0x28b   : > { %v1495_v46 = vpop.permute.xlu0 %1494  ;;  %v1483_v10 = vpop.permute.xlu1 %1482 }
 0x28c   : > { %v1500_v22 = vadd.f32 %v1495_v46, %v1486_v9  ;;  %v1487_v55 = vadd.f32 %v1483_v10, %v1473_v51 }
 0x28f   : > { %v1509_v12 = vpop.permute.xlu0 %1508  ;;  %v1497_v13 = vpop.permute.xlu1 %1496 }
 0x290   : > { %v1514_v17 = vadd.f32 %v1509_v12, %v1500_v22  ;;  %v1501_v58 = vadd.f32 %v1497_v13, %v1487_v55 }
 0x292   : > { %v1516_v16 = vsub.f32 0.0, %v1514_v17 }
 0x293   : > { %v1511_v11 = vpop.permute.xlu1 %1510 }
 0x294   : > { %v1518_v18 = vmul.f32 1.442695, %v1516_v16  ;;  %v1515_v19 = vadd.f32 %v1511_v11, %v1501_v58 }
 0x296   : > { %1829 = vpow2.f32 %v1518_v18  ;;  %v1517_v28 = vsub.f32 0.0, %v1515_v19 }
 0x298   : > { %v1520_v45 = vmul.f32 1.442695, %v1517_v28 }
 0x29a   : > { %1831 = vpow2.f32 %v1520_v45 }
 0x2a0   : > { %v1830_v20 = vpop.eup %1829 }
 0x2a1   : > { %v1522_v23 = vadd.f32 1.0, %v1830_v20 }
 0x2a3   : > { %1833 = vrcp.f32 %v1522_v23 }
 0x2a4   : > { %v1832_v24 = vpop.eup %1831 }
 0x2a5   : > { %v1523_v25 = vadd.f32 1.0, %v1832_v24 }
 0x2a7   : > { %1835 = vrcp.f32 %v1523_v25 }
 0x2ad   : > { %v1834_v26 = vpop.eup %1833 }
 0x2ae   : > { %v1528_v29 = vmul.f32 %v1837_v3, %v1834_v26  ;;  %v1530_v33 = vmul.f32 %v1838_v32, %v1834_v26  ;;  %v1532_v34 = vmul.f32 %v1839_v31, %v1834_v26  ;;  %v1534_v43 = vmul.f32 %v1840_v35, %v1834_v26 }
 0x2b0   : > { %1537 = vst.msk [vmem:[%s173_s25] sm:$0xff] %vm1536_vm3, %v1528_v29  ;;  %1539 = vst.msk [vmem:[%s173_s25 + $0x10] sm:$0xff] %vm1536_vm3, %v1530_v33 }
 0x2b1   : > { %1541 = vst.msk [vmem:[%s173_s25 + $0x20] sm:$0xff] %vm1536_vm3, %v1532_v34  ;;  %1543 = vst.msk [vmem:[%s173_s25 + $0x30] sm:$0xff] %vm1536_vm3, %v1534_v43  ;;  %v1836_v36 = vpop.eup %1835 }
 0x2b2   : > { %v1529_v39 = vmul.f32 %v1841_v38, %v1836_v36  ;;  %v1531_v14 = vmul.f32 %v1842_v15, %v1836_v36  ;;  %v1533_v42 = vmul.f32 %v1843_v41, %v1836_v36  ;;  %v1535_v21 = vmul.f32 %v1844_v30, %v1836_v36 }
 0x2b4   : > { %1538 = vst.msk [vmem:[%s173_s25 + $0x8] sm:$0xff] %vm1536_vm3, %v1529_v39  ;;  %1540 = vst.msk [vmem:[%s173_s25 + $0x18] sm:$0xff] %vm1536_vm3, %v1531_v14 }
 0x2b5   : > { %1542 = vst.msk [vmem:[%s173_s25 + $0x28] sm:$0xff] %vm1536_vm3, %v1533_v42  ;;  %1544 = vst.msk [vmem:[%s173_s25 + $0x38] sm:$0xff] %vm1536_vm3, %v1535_v21 }
 0x2b6   : > { %1901 = shalt.err (!%p1898_p0)
}
 0x2b7   : > { %s1902_s26 = scalar_lea.hbm %s2771_s17, 1024  ;;  %s1906_s5 = scalar_lea.hbm %s2827_s2, 2048 }
 0x2b8   : > { %p1903_p8 = scmp.ne.s32.totalorder %s2771_s17, %s1902_s26  ;;  %p1907_p1 = scmp.lt.u32.totalorder %s2771_s17, %s2827_s2 }
 0x2b9   : > { %p1908_p2 = scmp.lt.u32.totalorder %s1906_s5, %s1902_s26  ;;  %p1910_p12 = scmp.lt.u32.totalorder %s1902_s26, %s2771_s17 }
 0x2ba   : > { %p1904_p9 = pnand %p1903_p8, %p2841_p13 }
 0x2bb   : > { %p1909_p11 = por %p1908_p2, %p1907_p1 }
 0x2bc   : > { %p1905_p10 = pneg %p1904_p9 }
 0x2bd   : > { %p1911_p7 = por %p1910_p12, %p1909_p11 }
 0x2bf   : > { %p1912_p3 = pnand %p1911_p7, %p1905_p10 }
 0x2c1   : > { %1915 = shalt.err (!%p1912_p3)
}
 0x2c2   : > { %s1973_s24 = smov 128   ;;  %s1974_s8 = smov 8  }
 0x2c3   : > { %1766 = dma.vmem_to_hbm [thread:$0]  (%p2841_p13), %s2773_s7, 1024, %s2771_s17, %s1546_s13, %s1973_s24, %s1973_s24, %s1974_s8  }
 0x2c4 PF: > { %s1574_s16 = sand.u32 1, %s1946_s9   ;;  %p2842_p6 = scmp.ne.s32.totalorder %s2834_s22, 0 }
 0x2c5   : > { %p2843_p4 = scmp.ge.s32.totalorder %s1958_s12, 2  ;;  %s1575_s25 = scalar_lea.sflag [#allocation5], %s1574_s16 }
 0x2c7   : > { %p1777_p5 = pnand %p2843_p4, %p2842_p6 }
 0x2c9   : > { %1941 = dma.done.wait (!%p1777_p5), %s1575_s25, 1024  }
 0x2ca   : > { %1943 = vsyncadd (!%p1777_p5), %s1575_s25, 4294966272  ;;  %p16_p0 = scmp.ge.s32.totalorder %s2015_s15, 4   ;;  %s2844_s9 = smov %s1950_s10 }
 0x2cb   : > { %s2845_s10 = smov %s1954_s11  ;;  %s2846_s11 = smov %s2027_s18 }
 0x2cc   : > { %s2847_s12 = smov %s2015_s15  ;;  %18 = sbr.rel (!%p16_p0) target bundleno = 6 (0x6), region = 79 }
 0x2d3   :  { %1580 = vsyncpa [#allocation4], 1 }
 0x2d4   :  { %1582 = vsyncpa [#allocation4 + $0x1], 1 }
 0x2d5   :  { %1583 = vsyncpa [#allocation5], 1 }
 0x2d6   :  { %1585 = vsyncpa [#allocation5 + $0x1], 1 }
 0x2d7   :  { %1586 = vsyncpa [#allocation6], 1 }
 0x2d8   :  { %1588 = vsyncpa [#allocation6 + $0x1], 1 }

</bundles_post_ra>
